<compile_context>
chip_gen: v6e
topology: v6e:2x2x1
jax: 0.10.0
libtpu: 0.0.40
codegen_flags: <defaults>
</compile_context>

<pallas_src>
import functools
import math

import jax
import jax.numpy as jnp
from jax.experimental import pallas as pl
from jax.experimental.pallas import tpu as pltpu

GROUP = 128  # points per lane-group: K*128 input lanes -> N*128 output lanes


def _cdiv(a: int, b: int) -> int:
    return -(-a // b)


def _round_up(a: int, b: int) -> int:
    return _cdiv(a, b) * b


def _linear_relu_kernel(a_ref, b_ref, x_ref, o_ref):
    # a_ref: (K*128, N*128) f32 block-diagonal weights (constant across grid)
    # b_ref: (1, N*128) f32 tiled bias; x_ref: (tg, K*128); o_ref: (tg, N*128)
    y = jnp.dot(x_ref[...].astype(jnp.float32), a_ref[...],
                preferred_element_type=jnp.float32)
    y = y + b_ref[...]
    o_ref[...] = jnp.maximum(y, 0.0).astype(o_ref.dtype)


def _linear_add_relu_kernel(a_ref, b_ref, x_ref, r_ref, o_ref):
    # r_ref: (tg, N*128) residual streamed block-by-block in flat layout.
    y = jnp.dot(x_ref[...].astype(jnp.float32), a_ref[...],
                preferred_element_type=jnp.float32)
    y = y + b_ref[...] + r_ref[...].astype(jnp.float32)
    o_ref[...] = jnp.maximum(y, 0.0).astype(o_ref.dtype)


@functools.partial(jax.jit, static_argnames=("tile_groups",))
def model_forward(x, w, b, other=None, *, tile_groups=512):
    """x: (..., K); w: (K, N); b: (N,); other: None or broadcastable to (..., N)."""
    k_in, n_out = w.shape
    assert x.shape[-1] == k_in, "x last dim must equal Linear in_features"

    batch_shape = x.shape[:-1]
    m = int(math.prod(batch_shape))

    dts = [x.dtype, w.dtype]
    if other is not None:
        dts.append(jnp.asarray(other).dtype)
    out_dtype = jnp.result_type(*dts)

    w32 = w.astype(jnp.float32)
    b32 = b.astype(jnp.float32)

    # `other`: fold bias-like residuals into the bias (no (M, N) expansion);
    # stream full-size residuals in their natural flat layout.
    res_full = None
    if other is not None:
        o_arr = jnp.asarray(other)
        if o_arr.size == 1:
            b32 = b32 + o_arr.astype(jnp.float32).reshape(())
        elif o_arr.size == n_out and o_arr.shape[-1:] == (n_out,):
            b32 = b32 + o_arr.astype(jnp.float32).reshape((n_out,))
        else:
            if o_arr.shape != batch_shape + (n_out,):
                # TODO(synk): partially-broadcast residuals are materialized once
                # here; an index_map-level broadcast would avoid this rare copy.
                o_arr = jnp.broadcast_to(o_arr, batch_shape + (n_out,))
            res_full = o_arr

    # Flat lane-dense views (free row-major reshapes). Only pad the tail when
    # the flattened batch is not a multiple of 128 points (common image-like
    # shapes hit the no-pad path).
    m_pad = _round_up(max(m, 1), GROUP)
    g_total = m_pad // GROUP

    x_flat = x.reshape(-1)
    if m_pad != m:
        x_flat = jnp.pad(x_flat, (0, (m_pad - m) * k_in))
    x2d = x_flat.reshape(g_total, k_in * GROUP)

    res2d = None
    if res_full is not None:
        r_flat = res_full.reshape(-1)
        if m_pad != m:
            r_flat = jnp.pad(r_flat, (0, (m_pad - m) * n_out))
        res2d = r_flat.reshape(g_total, n_out * GROUP)

    # Fold the tiny (K, N) weight into a block-diagonal (K*128, N*128) matrix:
    # A[128-blocked] = kron(I_128, W); bias tiled per point across the lanes.
    a_mat = jnp.kron(jnp.eye(GROUP, dtype=jnp.float32), w32)      # (K*128, N*128)
    bias_row = jnp.tile(b32, GROUP).reshape(1, n_out * GROUP)     # (1, N*128)

    # Tile the group-row axis; keep >= ~4 grid steps for megacore sharding.
    if g_total <= 8:
        tile_g = g_total
    else:
        tile_g = min(tile_groups, _round_up(_cdiv(g_total, 4), 8))
    grid = (_cdiv(g_total, tile_g),)

    kw = k_in * GROUP
    nw = n_out * GROUP
    a_spec = pl.BlockSpec((kw, nw), lambda i: (0, 0))       # constant -> loaded once
    b_spec = pl.BlockSpec((1, nw), lambda i: (0, 0))
    x_spec = pl.BlockSpec((tile_g, kw), lambda i: (i, 0))
    o_spec = pl.BlockSpec((tile_g, nw), lambda i: (i, 0))

    out_shape = jax.ShapeDtypeStruct((g_total, nw), out_dtype)
    cparams = pltpu.CompilerParams(
        dimension_semantics=("parallel",),
        vmem_limit_bytes=32 * 1024 * 1024,
    )

    if res2d is None:
        out2d = pl.pallas_call(
            _linear_relu_kernel,
            out_shape=out_shape,
            grid=grid,
            in_specs=[a_spec, b_spec, x_spec],
            out_specs=o_spec,
            compiler_params=cparams,
        )(a_mat, bias_row, x2d)
    else:
        out2d = pl.pallas_call(
            _linear_add_relu_kernel,
            out_shape=out_shape,
            grid=grid,
            in_specs=[a_spec, b_spec, x_spec, o_spec],
            out_specs=o_spec,
            compiler_params=cparams,
        )(a_mat, bias_row, x2d, res2d)

    out_flat = out2d.reshape(-1)
    if m_pad != m:
        out_flat = out_flat[: m * n_out]
    return out_flat.reshape(batch_shape + (n_out,))


if __name__ == "__main__":
    key = jax.random.PRNGKey(0)
    kx, kw_, kb, ko, kc = jax.random.split(key, 5)

    # Channels-last analogue of the module's x1 = (1, 3, 64, 64): Linear(3, 8)
    # acts on the trailing dim, so the kernel input is (1, 64, 64, 3).
    N, H, W, C, OUT = 1, 64, 64, 3, 8

    x = jax.random.normal(kx, (N, H, W, C), dtype=jnp.float32)
    bound = 1.0 / (C ** 0.5)
    w = jax.random.uniform(kw_, (C, OUT), minval=-bound, maxval=bound,
                           dtype=jnp.float32)
    b = jax.random.uniform(kb, (OUT,), minval=-bound, maxval=bound,
                           dtype=jnp.float32)

    # Path 1: other=None (module default).
    y = jax.block_until_ready(model_forward(x, w, b))

    # Path 2: full-size residual `other` (streamed, never broadcast-expanded).
    other_full = jax.random.normal(ko, (N, H, W, OUT), dtype=jnp.float32)
    y2 = jax.block_until_ready(model_forward(x, w, b, other_full))

    # Path 3: per-channel (bias-like) `other` — folded into the bias row.
    other_chan = jax.random.normal(kc, (OUT,), dtype=jnp.float32)
    y3 = jax.block_until_ready(model_forward(x, w, b, other_chan))

    # Plain-JAX references.
    base = jnp.einsum("nhwc,co->nhwo", x, w) + b
    ref = jnp.maximum(base, 0.0)
    ref2 = jnp.maximum(base + other_full, 0.0)
    ref3 = jnp.maximum(base + other_chan, 0.0)
    assert jnp.allclose(y, ref, atol=1e-5), "mismatch (other=None)"
    assert jnp.allclose(y2, ref2, atol=1e-5), "mismatch (full other)"
    assert jnp.allclose(y3, ref3, atol=1e-5), "mismatch (channel other)"

    print("KERNEL_OK")
</pallas_src>

<mosaic_0001>
module attributes {stable_mosaic.version = 11 : i64} {
  func.func @_linear_relu_kernel(%arg0: i32, %arg1: memref<384x1024xf32, #tpu.memory_space<vmem>>, %arg2: memref<1x1024xf32, #tpu.memory_space<vmem>>, %arg3: memref<8x384xf32, #tpu.memory_space<vmem>>, %arg4: memref<8x1024xf32, #tpu.memory_space<vmem>>) attributes {dimension_semantics = [#tpu.dimension_semantics<parallel>], iteration_bounds = array<i64: 4>, scalar_prefetch = 0 : i64, scratch_operands = 0 : i64, tpu.core_type = #tpu.core_type<tc>, window_params = [{pipeline_mode = #tpu.pipeline_mode<synchronous>, transform_indices = @transform_0, window_bounds = array<i64: 384, 1024>}, {pipeline_mode = #tpu.pipeline_mode<synchronous>, transform_indices = @transform_1, window_bounds = array<i64: 1, 1024>}, {transform_indices = @transform_2, window_bounds = array<i64: 8, 384>}, {transform_indices = @transform_3, window_bounds = array<i64: 8, 1024>}]} {
    %c0 = arith.constant 0 : index
    %c0_0 = arith.constant 0 : index
    %0 = vector.load %arg3[%c0, %c0_0] : memref<8x384xf32, #tpu.memory_space<vmem>>, vector<8x384xf32>
    %c0_1 = arith.constant 0 : index
    %c0_2 = arith.constant 0 : index
    %1 = vector.load %arg1[%c0_1, %c0_2] : memref<384x1024xf32, #tpu.memory_space<vmem>>, vector<384x1024xf32>
    %cst = arith.constant dense<0.000000e+00> : vector<8x1024xf32>
    %2 = tpu.matmul %0, %1, %cst {dimension_numbers = #tpu.dot_dimension_numbers<[1], [0], [0], [1], [0, 0, 1, 1], [], []>} : vector<8x384xf32>, vector<384x1024xf32>, vector<8x1024xf32> -> vector<8x1024xf32>
    %c0_3 = arith.constant 0 : index
    %c0_4 = arith.constant 0 : index
    %3 = vector.load %arg2[%c0_3, %c0_4] : memref<1x1024xf32, #tpu.memory_space<vmem>>, vector<1x1024xf32>
    %4 = vector.broadcast %3 : vector<1x1024xf32> to vector<8x1024xf32>
    %5 = arith.addf %2, %4 : vector<8x1024xf32>
    %cst_5 = arith.constant 0.000000e+00 : f32
    %6 = vector.broadcast %cst_5 : f32 to vector<8x1024xf32>
    %7 = arith.maximumf %5, %6 : vector<8x1024xf32>
    %c0_6 = arith.constant 0 : index
    %c0_7 = arith.constant 0 : index
    %8 = vector.load %arg4[%c0_6, %c0_7] : memref<8x1024xf32, #tpu.memory_space<vmem>>, vector<8x1024xf32>
    tpu.vector_store %arg4[%c0_6, %c0_7], %7 {strides = array<i32>} : memref<8x1024xf32, #tpu.memory_space<vmem>>, vector<8x1024xf32>,
    return
  }
  func.func @transform_0(%arg0: i32) -> (i32, i32) {
    %c0_i32 = arith.constant 0 : i32
    %c0_i32_0 = arith.constant 0 : i32
    %c0_i32_1 = arith.constant 0 : i32
    return %c0_i32, %c0_i32_0 : i32, i32
  }
  func.func @transform_1(%arg0: i32) -> (i32, i32) {
    %c0_i32 = arith.constant 0 : i32
    %c0_i32_0 = arith.constant 0 : i32
    %c0_i32_1 = arith.constant 0 : i32
    return %c0_i32, %c0_i32_0 : i32, i32
  }
  func.func @transform_2(%arg0: i32) -> (i32, i32) {
    %c0_i32 = arith.constant 0 : i32
    %c0_i32_0 = arith.constant 0 : i32
    return %arg0, %c0_i32 : i32, i32
  }
  func.func @transform_3(%arg0: i32) -> (i32, i32) {
    %c0_i32 = arith.constant 0 : i32
    %c0_i32_0 = arith.constant 0 : i32
    return %arg0, %c0_i32 : i32, i32
  }
}

</mosaic_0001>

<bundles_post_ra>
// kernel: tile.8
= control target key start
LH: loop header
LB: loop body
LE: loop exit
PB: predicated region body
PF: predicated region fallthrough
CT: control target
= control target key end

     0   :  { %s112_s0 = inlined_call_operand.vmem [shape: f32[8], index: 0, kind: input, shape index: {}]   ;;  %s113_s1 = inlined_call_operand.vmem [shape: f32[128,8], index: 1, kind: output, shape index: {}]  }
   0x1   :  { %v4_v0 = vld [vmem:[%s112_s0] ss:$0 sm:$0xff] }
   0x2   :  { %5 = vst [vmem:[%s113_s1] sm:$0xff] %v4_v0  ;;  %36 = vst [vmem:[%s113_s1 + $0x8] sm:$0xff] %v4_v0 }
   0x3   :  { %37 = vst [vmem:[%s113_s1 + $0x10] sm:$0xff] %v4_v0  ;;  %38 = vst [vmem:[%s113_s1 + $0x18] sm:$0xff] %v4_v0 }
   0x4   :  { %39 = vst [vmem:[%s113_s1 + $0x20] sm:$0xff] %v4_v0  ;;  %40 = vst [vmem:[%s113_s1 + $0x28] sm:$0xff] %v4_v0 }
   0x5   :  { %41 = vst [vmem:[%s113_s1 + $0x30] sm:$0xff] %v4_v0  ;;  %42 = vst [vmem:[%s113_s1 + $0x38] sm:$0xff] %v4_v0 }
   0x6   :  { %43 = vst [vmem:[%s113_s1 + $0x40] sm:$0xff] %v4_v0  ;;  %44 = vst [vmem:[%s113_s1 + $0x48] sm:$0xff] %v4_v0 }
   0x7   :  { %45 = vst [vmem:[%s113_s1 + $0x50] sm:$0xff] %v4_v0  ;;  %46 = vst [vmem:[%s113_s1 + $0x58] sm:$0xff] %v4_v0 }
   0x8   :  { %47 = vst [vmem:[%s113_s1 + $0x60] sm:$0xff] %v4_v0  ;;  %48 = vst [vmem:[%s113_s1 + $0x68] sm:$0xff] %v4_v0 }
   0x9   :  { %49 = vst [vmem:[%s113_s1 + $0x70] sm:$0xff] %v4_v0  ;;  %50 = vst [vmem:[%s113_s1 + $0x78] sm:$0xff] %v4_v0 }

// kernel: tile.9
= control target key start
LH: loop header
LB: loop body
LE: loop exit
PB: predicated region body
PF: predicated region fallthrough
CT: control target
= control target key end

     0   :  { %vm6_vm0 = vcmask 1043458   ;;  %vm10_vm1 = vcmask 1045508   ;;  %vm14_vm2 = vcmask 1047558   ;;  %s20_s6 = smov 3  ;;  %s23_s7 = smov 12  ;;  %vm16_vm3 = vcmask 64512   ;;  %s797_s0 = inlined_call_operand.vmem [shape: f32[128,8], index: 0, kind: input, shape index: {}]   ;;  %s798_s1 = inlined_call_operand.vmem [shape: f32[1,1024], index: 1, kind: output, shape index: {}]  }
   0x1   :  { %v426_v0 = vld [vmem:[%s797_s0 + $0xf] ss:$16 sm:%s20_s6]   ;;  %s28_s12 = smov 48  ;;  %s33_s13 = smov 192  ;;  %vm39_vm4 = vcmask 1048512   ;;  %vm62_vm5 = vcmask 982912  }
   0x2   :  { %v427_v1 = vld [vmem:[%s797_s0 + $0xf] ss:$16 sm:%s23_s7]   ;;  %s66_s18 = smov 3  ;;  %s69_s21 = smov 12  ;;  %vm85_vm6 = vcmask 917312   ;;  %vm108_vm7 = vcmask 851712  }
   0x3   :  { %v26_v2 = vsel %vm6_vm0, %v427_v1, %v426_v0  ;;  %v428_v3 = vld [vmem:[%s797_s0 + $0xf] ss:$16 sm:%s28_s12]   ;;  %v434_v6 = vld [vmem:[%s797_s0 + $0xd] ss:$16 sm:%s66_s18]   ;;  %s74_s22 = smov 48  ;;  %s79_s27 = smov 192 }
   0x4   :  { %v429_v4 = vld [vmem:[%s797_s0 + $0xf] ss:$16 sm:%s33_s13]   ;;  %v31_v5 = vsel %vm10_vm1, %v428_v3, %v26_v2  ;;  %v435_v8 = vld [vmem:[%s797_s0 + $0xd] ss:$16 sm:%s69_s21]   ;;  %s508_s28 = smov 120   ;;  %s43_s2 = smov 3 }
   0x5   :  { %v36_v7 = vsel %vm14_vm2, %v429_v4, %v31_v5  ;;  %v436_v9 = vld [vmem:[%s797_s0 + $0xd] ss:$16 sm:%s74_s22]   ;;  %v72_v10 = vsel %vm6_vm0, %v435_v8, %v434_v6  ;;  %s46_s3 = smov 12  ;;  %v430_v13 = vld [vmem:[%s797_s0 + $0xe] ss:$16 sm:%s43_s2]   ;;  %s51_s8 = smov 48 }
   0x6   :  { %37 = vrot.lane.b32.xlu0 %v36_v7, %s508_s28  ;;  %v437_v11 = vld [vmem:[%s797_s0 + $0xd] ss:$16 sm:%s79_s27]   ;;  %v77_v12 = vsel %vm10_vm1, %v436_v9, %v72_v10  ;;  %s56_s9 = smov 192  ;;  %s89_s14 = smov 3  ;;  %vm131_vm8 = vcmask 786112   ;;  %vm154_vm9 = vcmask 720512  }
   0x7   :  { %v431_v14 = vld [vmem:[%s797_s0 + $0xe] ss:$16 sm:%s46_s3]   ;;  %v82_v15 = vsel %vm14_vm2, %v437_v11, %v77_v12  ;;  %s509_s15 = smov 104   ;;  %v438_v20 = vld [vmem:[%s797_s0 + $0xc] ss:$16 sm:%s89_s14]   ;;  %s92_s18 = smov 12 }
   0x8   :  { %v49_v16 = vsel %vm6_vm0, %v431_v14, %v430_v13  ;;  %v432_v17 = vld [vmem:[%s797_s0 + $0xe] ss:$16 sm:%s51_s8]   ;;  %83 = vrot.lane.b32.xlu1 %v82_v15, %s509_s15  ;;  %s97_s19 = smov 48  ;;  %s102_s24 = smov 192  ;;  %vm177_vm10 = vcmask 654912   ;;  %vm200_vm11 = vcmask 589312  }
   0x9   :  { %v433_v18 = vld [vmem:[%s797_s0 + $0xe] ss:$16 sm:%s56_s9]   ;;  %v54_v19 = vsel %vm10_vm1, %v432_v17, %v49_v16  ;;  %v439_v22 = vld [vmem:[%s797_s0 + $0xc] ss:$16 sm:%s92_s18]   ;;  %s510_s25 = smov 112   ;;  %s112_s28 = smov 3 }
   0xa   :  { %v59_v21 = vsel %vm14_vm2, %v433_v18, %v54_v19  ;;  %v440_v23 = vld [vmem:[%s797_s0 + $0xc] ss:$16 sm:%s97_s19]   ;;  %v95_v24 = vsel %vm6_vm0, %v439_v22, %v438_v20  ;;  %s115_s29 = smov 12  ;;  %v442_v27 = vld [vmem:[%s797_s0 + $0xb] ss:$16 sm:%s112_s28]   ;;  %s120_s5 = smov 48 }
   0xb   :  { %60 = vrot.lane.b32.xlu0 %v59_v21, %s510_s25  ;;  %v441_v25 = vld [vmem:[%s797_s0 + $0xc] ss:$16 sm:%s102_s24]   ;;  %v100_v26 = vsel %vm10_vm1, %v440_v23, %v95_v24  ;;  %s125_s6 = smov 192  ;;  %s135_s11 = smov 3  ;;  %vm223_vm12 = vcmask 523712   ;;  %vm246_vm13 = vcmask 458112  }
   0xc   :  { %v443_v28 = vld [vmem:[%s797_s0 + $0xb] ss:$16 sm:%s115_s29]   ;;  %v105_v29 = vsel %vm14_vm2, %v441_v25, %v100_v26  ;;  %s511_s12 = smov 96   ;;  %v446_v34 = vld [vmem:[%s797_s0 + $0xa] ss:$16 sm:%s135_s11]   ;;  %s138_s15 = smov 12 }
   0xd   :  { %v118_v30 = vsel %vm6_vm0, %v443_v28, %v442_v27  ;;  %v444_v31 = vld [vmem:[%s797_s0 + $0xb] ss:$16 sm:%s120_s5]   ;;  %106 = vrot.lane.b32.xlu1 %v105_v29, %s511_s12  ;;  %s143_s16 = smov 48  ;;  %s148_s21 = smov 192  ;;  %vm269_vm14 = vcmask 392512   ;;  %vm292_vm15 = vcmask 326912  }
   0xe   :  { %v445_v32 = vld [vmem:[%s797_s0 + $0xb] ss:$16 sm:%s125_s6]   ;;  %v123_v33 = vsel %vm10_vm1, %v444_v31, %v118_v30  ;;  %v447_v36 = vld [vmem:[%s797_s0 + $0xa] ss:$16 sm:%s138_s15]   ;;  %s512_s22 = smov 88   ;;  %s158_s25 = smov 3 }
   0xf   :  { %v128_v35 = vsel %vm14_vm2, %v445_v32, %v123_v33  ;;  %v448_v37 = vld [vmem:[%s797_s0 + $0xa] ss:$16 sm:%s143_s16]   ;;  %v141_v38 = vsel %vm6_vm0, %v447_v36, %v446_v34  ;;  %s161_s26 = smov 12  ;;  %v450_v41 = vld [vmem:[%s797_s0 + $0x9] ss:$16 sm:%s158_s25]   ;;  %s166_s2 = smov 48 }
  0x10   :  { %129 = vrot.lane.b32.xlu0 %v128_v35, %s512_s22  ;;  %v449_v39 = vld [vmem:[%s797_s0 + $0xa] ss:$16 sm:%s148_s21]   ;;  %v146_v40 = vsel %vm10_vm1, %v448_v37, %v141_v38  ;;  %s171_s3 = smov 192  ;;  %s181_s8 = smov 3 }
  0x11   :  { %v451_v42 = vld [vmem:[%s797_s0 + $0x9] ss:$16 sm:%s161_s26]   ;;  %v151_v43 = vsel %vm14_vm2, %v449_v39, %v146_v40  ;;  %s513_s9 = smov 80   ;;  %v454_v48 = vld [vmem:[%s797_s0 + $0x8] ss:$16 sm:%s181_s8]   ;;  %s184_s12 = smov 12 }
  0x12   :  { %v164_v44 = vsel %vm6_vm0, %v451_v42, %v450_v41  ;;  %v452_v45 = vld [vmem:[%s797_s0 + $0x9] ss:$16 sm:%s166_s2]   ;;  %152 = vrot.lane.b32.xlu1 %v151_v43, %s513_s9  ;;  %s189_s13 = smov 48  ;;  %s194_s18 = smov 192 }
  0x13   :  { %v453_v46 = vld [vmem:[%s797_s0 + $0x9] ss:$16 sm:%s171_s3]   ;;  %v169_v47 = vsel %vm10_vm1, %v452_v45, %v164_v44  ;;  %v455_v50 = vld [vmem:[%s797_s0 + $0x8] ss:$16 sm:%s184_s12]   ;;  %s514_s19 = smov 72   ;;  %s204_s22 = smov 3 }
  0x14   :  { %v174_v49 = vsel %vm14_vm2, %v453_v46, %v169_v47  ;;  %v456_v51 = vld [vmem:[%s797_s0 + $0x8] ss:$16 sm:%s189_s13]   ;;  %v187_v52 = vsel %vm6_vm0, %v455_v50, %v454_v48  ;;  %s207_s23 = smov 12  ;;  %v458_v55 = vld [vmem:[%s797_s0 + $0x7] ss:$16 sm:%s204_s22]   ;;  %s212_s28 = smov 48 }
  0x15   :  { %175 = vrot.lane.b32.xlu0 %v174_v49, %s514_s19  ;;  %v457_v53 = vld [vmem:[%s797_s0 + $0x8] ss:$16 sm:%s194_s18]   ;;  %v192_v54 = vsel %vm10_vm1, %v456_v51, %v187_v52  ;;  %s217_s29 = smov 192  ;;  %s227_s5 = smov 3 }
  0x16   :  { %v459_v56 = vld [vmem:[%s797_s0 + $0x7] ss:$16 sm:%s207_s23]   ;;  %v197_v57 = vsel %vm14_vm2, %v457_v53, %v192_v54  ;;  %s515_s6 = smov 64   ;;  %v462_v62 = vld [vmem:[%s797_s0 + $0x6] ss:$16 sm:%s227_s5]   ;;  %s230_s9 = smov 12 }
  0x17   :  { %v210_v58 = vsel %vm6_vm0, %v459_v56, %v458_v55  ;;  %v460_v59 = vld [vmem:[%s797_s0 + $0x7] ss:$16 sm:%s212_s28]   ;;  %198 = vrot.lane.b32.xlu1 %v197_v57, %s515_s6  ;;  %s235_s10 = smov 48  ;;  %s240_s15 = smov 192 }
  0x18   :  { %v461_v60 = vld [vmem:[%s797_s0 + $0x7] ss:$16 sm:%s217_s29]   ;;  %v215_v61 = vsel %vm10_vm1, %v460_v59, %v210_v58  ;;  %v463_v0 = vld [vmem:[%s797_s0 + $0x6] ss:$16 sm:%s230_s9]   ;;  %s516_s16 = smov 56   ;;  %s250_s19 = smov 3 }
  0x19   :  { %v220_v63 = vsel %vm14_vm2, %v461_v60, %v215_v61  ;;  %v464_v1 = vld [vmem:[%s797_s0 + $0x6] ss:$16 sm:%s235_s10]   ;;  %v233_v2 = vsel %vm6_vm0, %v463_v0, %v462_v62  ;;  %s253_s20 = smov 12  ;;  %v466_v5 = vld [vmem:[%s797_s0 + $0x5] ss:$16 sm:%s250_s19]   ;;  %s258_s25 = smov 48 }
  0x1a   :  { %221 = vrot.lane.b32.xlu0 %v220_v63, %s516_s16  ;;  %v465_v3 = vld [vmem:[%s797_s0 + $0x6] ss:$16 sm:%s240_s15]   ;;  %v238_v4 = vsel %vm10_vm1, %v464_v1, %v233_v2  ;;  %s263_s26 = smov 192  ;;  %s273_s2 = smov 3 }
  0x1b   :  { %v467_v6 = vld [vmem:[%s797_s0 + $0x5] ss:$16 sm:%s253_s20]   ;;  %v243_v7 = vsel %vm14_vm2, %v465_v3, %v238_v4  ;;  %s517_s3 = smov 48   ;;  %v470_v12 = vld [vmem:[%s797_s0 + $0x4] ss:$16 sm:%s273_s2]   ;;  %s276_s6 = smov 12 }
  0x1c   :  { %v256_v8 = vsel %vm6_vm0, %v467_v6, %v466_v5  ;;  %v468_v9 = vld [vmem:[%s797_s0 + $0x5] ss:$16 sm:%s258_s25]   ;;  %244 = vrot.lane.b32.xlu1 %v243_v7, %s517_s3  ;;  %s281_s7 = smov 48  ;;  %s286_s12 = smov 192 }
  0x1d   :  { %v469_v10 = vld [vmem:[%s797_s0 + $0x5] ss:$16 sm:%s263_s26]   ;;  %v261_v11 = vsel %vm10_vm1, %v468_v9, %v256_v8  ;;  %v471_v14 = vld [vmem:[%s797_s0 + $0x4] ss:$16 sm:%s276_s6]   ;;  %s518_s13 = smov 40   ;;  %s296_s16 = smov 3 }
  0x1e   :  { %v266_v13 = vsel %vm14_vm2, %v469_v10, %v261_v11  ;;  %v472_v15 = vld [vmem:[%s797_s0 + $0x4] ss:$16 sm:%s281_s7]   ;;  %v279_v16 = vsel %vm6_vm0, %v471_v14, %v470_v12  ;;  %s299_s17 = smov 12  ;;  %v474_v19 = vld [vmem:[%s797_s0 + $0x3] ss:$16 sm:%s296_s16]   ;;  %s304_s22 = smov 48 }
  0x1f   :  { %267 = vrot.lane.b32.xlu0 %v266_v13, %s518_s13  ;;  %v473_v17 = vld [vmem:[%s797_s0 + $0x4] ss:$16 sm:%s286_s12]   ;;  %v284_v18 = vsel %vm10_vm1, %v472_v15, %v279_v16  ;;  %s309_s23 = smov 192  ;;  %s319_s28 = smov 3 }
  0x20   :  { %v475_v20 = vld [vmem:[%s797_s0 + $0x3] ss:$16 sm:%s299_s17]   ;;  %v289_v21 = vsel %vm14_vm2, %v473_v17, %v284_v18  ;;  %s519_s29 = smov 32   ;;  %v478_v26 = vld [vmem:[%s797_s0 + $0x2] ss:$16 sm:%s319_s28]   ;;  %s322_s3 = smov 12 }
  0x21   :  { %v302_v22 = vsel %vm6_vm0, %v475_v20, %v474_v19  ;;  %v476_v23 = vld [vmem:[%s797_s0 + $0x3] ss:$16 sm:%s304_s22]   ;;  %290 = vrot.lane.b32.xlu1 %v289_v21, %s519_s29  ;;  %s327_s4 = smov 48  ;;  %s332_s9 = smov 192 }
  0x22   :  { %v477_v24 = vld [vmem:[%s797_s0 + $0x3] ss:$16 sm:%s309_s23]   ;;  %v307_v25 = vsel %vm10_vm1, %v476_v23, %v302_v22  ;;  %v479_v28 = vld [vmem:[%s797_s0 + $0x2] ss:$16 sm:%s322_s3]   ;;  %s520_s10 = smov 24   ;;  %s342_s13 = smov 3 }
  0x23   :  { %v312_v27 = vsel %vm14_vm2, %v477_v24, %v307_v25  ;;  %v480_v29 = vld [vmem:[%s797_s0 + $0x2] ss:$16 sm:%s327_s4]   ;;  %v325_v30 = vsel %vm6_vm0, %v479_v28, %v478_v26  ;;  %s345_s14 = smov 12  ;;  %v482_v33 = vld [vmem:[%s797_s0 + $0x1] ss:$16 sm:%s342_s13]   ;;  %s350_s19 = smov 48 }
  0x24   :  { %313 = vrot.lane.b32.xlu0 %v312_v27, %s520_s10  ;;  %v481_v31 = vld [vmem:[%s797_s0 + $0x2] ss:$16 sm:%s332_s9]   ;;  %v330_v32 = vsel %vm10_vm1, %v480_v29, %v325_v30  ;;  %s355_s20 = smov 192  ;;  %s8_s25 = smov 48 }
  0x25   :  { %v483_v34 = vld [vmem:[%s797_s0 + $0x1] ss:$16 sm:%s345_s14]   ;;  %v335_v35 = vsel %vm14_vm2, %v481_v31, %v330_v32  ;;  %s521_s26 = smov 16   ;;  %v9_v40 = vld [vmem:[%s797_s0] ss:$16 sm:%s8_s25]   ;;  %s12_s29 = smov 192 }
  0x26   :  { %v348_v36 = vsel %vm6_vm0, %v483_v34, %v482_v33  ;;  %v484_v37 = vld [vmem:[%s797_s0 + $0x1] ss:$16 sm:%s350_s19]   ;;  %336 = vrot.lane.b32.xlu1 %v335_v35, %s521_s26  ;;  %s2_s30 = smov 3  ;;  %s4_s6 = smov 12 }
  0x27   :  { %v485_v38 = vld [vmem:[%s797_s0 + $0x1] ss:$16 sm:%s355_s20]   ;;  %v353_v39 = vsel %vm10_vm1, %v484_v37, %v348_v36  ;;  %v13_v42 = vld [vmem:[%s797_s0] ss:$16 sm:%s12_s29]   ;;  %s522_s7 = smov 8  }
  0x28   :  { %v358_v41 = vsel %vm14_vm2, %v485_v38, %v353_v39  ;;  %v3_v43 = vld [vmem:[%s797_s0] ss:$16 sm:%s2_s30]  }
  0x29   :  { %359 = vrot.lane.b32.xlu0 %v358_v41, %s522_s7  ;;  %v5_v44 = vld [vmem:[%s797_s0] ss:$16 sm:%s4_s6]  }
  0x2a   :  { %v7_v45 = vsel %vm6_vm0, %v5_v44, %v3_v43  ;;  %vm315_vm0 = vcmask 261312  }
  0x2b   :  { %v11_v46 = vsel %vm10_vm1, %v9_v40, %v7_v45  ;;  %vm338_vm1 = vcmask 195712  }
  0x2c   :  { %v15_v47 = vsel %vm14_vm2, %v13_v42, %v11_v46  ;;  %vm361_vm2 = vcmask 130112  }
  0x2d   :  { %17 = vst.msk [vmem:[#allocation0] ss:$8 sm:$0xf] %vm16_vm3, %v15_v47   ;;  %18 = vst.msk [vmem:[#allocation0] ss:$8 sm:$0xf0] %vm16_vm3, %v15_v47  }
  0x78   :  { %v38_v48 = vpop.permute.xlu0 %37  }
  0x79   :  { %40 = vst.msk [vmem:[#allocation0] ss:$8 sm:$0xf] %vm39_vm4, %v38_v48   ;;  %41 = vst.msk [vmem:[#allocation0] ss:$8 sm:$0xf0] %vm39_vm4, %v38_v48  }
  0x7a   :  { %v84_v49 = vpop.permute.xlu1 %83  }
  0x7d   :  { %v61_v50 = vpop.permute.xlu0 %60  }
  0x7e   :  { %63 = vst.msk [vmem:[#allocation0] ss:$8 sm:$0xf] %vm62_vm5, %v61_v50   ;;  %64 = vst.msk [vmem:[#allocation0] ss:$8 sm:$0xf0] %vm62_vm5, %v61_v50  }
  0x7f   :  { %86 = vst.msk [vmem:[#allocation0] ss:$8 sm:$0xf] %vm85_vm6, %v84_v49   ;;  %87 = vst.msk [vmem:[#allocation0] ss:$8 sm:$0xf0] %vm85_vm6, %v84_v49   ;;  %v107_v51 = vpop.permute.xlu1 %106  }
  0x80   :  { %109 = vst.msk [vmem:[#allocation0] ss:$8 sm:$0xf] %vm108_vm7, %v107_v51   ;;  %110 = vst.msk [vmem:[#allocation0] ss:$8 sm:$0xf0] %vm108_vm7, %v107_v51  }
  0x82   :  { %v130_v52 = vpop.permute.xlu0 %129  }
  0x83   :  { %132 = vst.msk [vmem:[#allocation0] ss:$8 sm:$0xf] %vm131_vm8, %v130_v52   ;;  %133 = vst.msk [vmem:[#allocation0] ss:$8 sm:$0xf0] %vm131_vm8, %v130_v52  }
  0x84   :  { %v153_v53 = vpop.permute.xlu1 %152  }
  0x85   :  { %155 = vst.msk [vmem:[#allocation0] ss:$8 sm:$0xf] %vm154_vm9, %v153_v53   ;;  %156 = vst.msk [vmem:[#allocation0] ss:$8 sm:$0xf0] %vm154_vm9, %v153_v53  }
  0x87   :  { %v176_v54 = vpop.permute.xlu0 %175  }
  0x88   :  { %178 = vst.msk [vmem:[#allocation0] ss:$8 sm:$0xf] %vm177_vm10, %v176_v54   ;;  %179 = vst.msk [vmem:[#allocation0] ss:$8 sm:$0xf0] %vm177_vm10, %v176_v54  }
  0x89   :  { %v199_v55 = vpop.permute.xlu1 %198  }
  0x8a   :  { %201 = vst.msk [vmem:[#allocation0] ss:$8 sm:$0xf] %vm200_vm11, %v199_v55   ;;  %202 = vst.msk [vmem:[#allocation0] ss:$8 sm:$0xf0] %vm200_vm11, %v199_v55  }
  0x8c   :  { %v222_v56 = vpop.permute.xlu0 %221  }
  0x8d   :  { %224 = vst.msk [vmem:[#allocation0] ss:$8 sm:$0xf] %vm223_vm12, %v222_v56   ;;  %225 = vst.msk [vmem:[#allocation0] ss:$8 sm:$0xf0] %vm223_vm12, %v222_v56  }
  0x8e   :  { %v245_v57 = vpop.permute.xlu1 %244  }
  0x8f   :  { %247 = vst.msk [vmem:[#allocation0] ss:$8 sm:$0xf] %vm246_vm13, %v245_v57   ;;  %248 = vst.msk [vmem:[#allocation0] ss:$8 sm:$0xf0] %vm246_vm13, %v245_v57  }
  0x91   :  { %v268_v58 = vpop.permute.xlu0 %267  }
  0x92   :  { %270 = vst.msk [vmem:[#allocation0] ss:$8 sm:$0xf] %vm269_vm14, %v268_v58   ;;  %271 = vst.msk [vmem:[#allocation0] ss:$8 sm:$0xf0] %vm269_vm14, %v268_v58  }
  0x93   :  { %v291_v59 = vpop.permute.xlu1 %290  }
  0x94   :  { %293 = vst.msk [vmem:[#allocation0] ss:$8 sm:$0xf] %vm292_vm15, %v291_v59   ;;  %294 = vst.msk [vmem:[#allocation0] ss:$8 sm:$0xf0] %vm292_vm15, %v291_v59  }
  0x96   :  { %v314_v60 = vpop.permute.xlu0 %313  }
  0x97   :  { %316 = vst.msk [vmem:[#allocation0] ss:$8 sm:$0xf] %vm315_vm0, %v314_v60   ;;  %317 = vst.msk [vmem:[#allocation0] ss:$8 sm:$0xf0] %vm315_vm0, %v314_v60  }
  0x98   :  { %v337_v61 = vpop.permute.xlu1 %336  }
  0x99   :  { %339 = vst.msk [vmem:[#allocation0] ss:$8 sm:$0xf] %vm338_vm1, %v337_v61   ;;  %340 = vst.msk [vmem:[#allocation0] ss:$8 sm:$0xf0] %vm338_vm1, %v337_v61  }
  0x9b   :  { %v360_v62 = vpop.permute.xlu0 %359  }
  0x9c   :  { %362 = vst.msk [vmem:[#allocation0] ss:$8 sm:$0xf] %vm361_vm2, %v360_v62   ;;  %363 = vst.msk [vmem:[#allocation0] ss:$8 sm:$0xf0] %vm361_vm2, %v360_v62  }
  0xa3   :  { %v368_v63 = vld [vmem:[#allocation0] sm:$0x1]  ;;  %v373_v0 = vld [vmem:[#allocation0 + $0x8] sm:$0x1]  ;;  %v379_v1 = vld [vmem:[#allocation0 + $0x10] sm:$0x1] }
  0xa4   :  { %371 = vst [vmem:[%s798_s1] sm:$0x1] %v368_v63  ;;  %486 = vst [vmem:[%s798_s1 + $0x1] sm:$0x1] %v373_v0  ;;  %v386_v2 = vld [vmem:[#allocation0 + $0x18] sm:$0x1] }
  0xa5   :  { %487 = vst [vmem:[%s798_s1 + $0x2] sm:$0x1] %v379_v1  ;;  %v393_v3 = vld [vmem:[#allocation0 + $0x20] sm:$0x1]  ;;  %v400_v4 = vld [vmem:[#allocation0 + $0x28] sm:$0x1] }
  0xa6   :  { %488 = vst [vmem:[%s798_s1 + $0x3] sm:$0x1] %v386_v2  ;;  %489 = vst [vmem:[%s798_s1 + $0x4] sm:$0x1] %v393_v3  ;;  %v407_v5 = vld [vmem:[#allocation0 + $0x30] sm:$0x1] }
  0xa7   :  { %490 = vst [vmem:[%s798_s1 + $0x5] sm:$0x1] %v400_v4  ;;  %v414_v6 = vld [vmem:[#allocation0 + $0x38] sm:$0x1]  ;;  %491 = vst [vmem:[%s798_s1 + $0x6] sm:$0x1] %v407_v5 }
  0xa8   :  { %492 = vst [vmem:[%s798_s1 + $0x7] sm:$0x1] %v414_v6 }

// kernel: model_forward.1
= control target key start
LH: loop header
LB: loop body
LE: loop exit
PB: predicated region body
PF: predicated region fallthrough
CT: control target
= control target key end

     0   :  { %s1292_s12 = smov 0   ;;  %s2515_s0 = inlined_call_operand.vmem [shape: f32[384,1024], index: 0, kind: input, shape index: {}]   ;;  %s2516_s1 = inlined_call_operand.vmem [shape: f32[1,1024], index: 1, kind: input, shape index: {}]   ;;  %s2517_s2 = inlined_call_operand.vmem [shape: f32[32,384], index: 2, kind: input, shape index: {}]   ;;  %s2518_s3 = inlined_call_operand.vmem [shape: f32[32,1024], index: 3, kind: output, shape index: {}]  }
   0x1 LB: > { %s1239_s13 = sadd.s32 4294967295, %s1269_s12   ;;  %p1243_p0 = scmp.ge.s32.totalorder %s1269_s12, 1  ;;  %s1269_s12 = sphi %s1292_s12, %s13_s12  }
   0x2   : > { %p137_p1 = scmp.lt.s32.totalorder %s1269_s12, 5 }
   0x4   : > { %p138_p2 = pnand %p1243_p0, %p137_p1 }
   0x5   : > { %p1416_p3 = scmp.lt.s32.totalorder (!%p138_p2), %s1239_s13, 3 }
   0x6   : > { %141 = sbr.rel (%p138_p2) target bundleno = 413 (0x19d), region = 32 }
   0xb   : > { %v295_v0 = vld [vmem:[%s2515_s0 + $0x3c8] sm:$0xff]  ;;  %v294_v2 = vld [vmem:[%s2515_s0 + $0x3c0] sm:$0xff]  ;;  %s2521_s13 = smov (!%p1416_p3, %s1239_s13), 3 }
   0xc   : > { %v551_v1 = vld [vmem:[%s2515_s0 + $0xbc8] sm:$0xff]  ;;  %600 = vmatprep.subr.mxu0 %v295_v0  ;;  %v550_v3 = vld [vmem:[%s2515_s0 + $0xbc0] sm:$0xff]  ;;  %s1250_s23 = smul.u32 24, %s2521_s13  ;;  %s1249_s15 = sshll.u32 %s2521_s13, 6 }
   0xd   : > { %671 = vmatprep.subr.mxu1 %v551_v1  ;;  %v287_v4 = vld [vmem:[%s2515_s0 + $0x388] sm:$0xff]  ;;  %601 = vmatpush1.msra.mxu0 %v294_v2  ;;  %v286_v6 = vld [vmem:[%s2515_s0 + $0x380] sm:$0xff]  ;;  %v297_v2 = vld [vmem:[%s2515_s0 + $0x3d8] sm:$0xff]  ;;  %s2502_s18 = scalar_lea.vmem %s2518_s3, %s1249_s15 }
   0xe   : > { %v543_v5 = vld [vmem:[%s2515_s0 + $0xb88] sm:$0xff]  ;;  %672 = vmatpush1.msra.mxu1 %v550_v3  ;;  %v542_v7 = vld [vmem:[%s2515_s0 + $0xb80] sm:$0xff]  ;;  %602 = vmatprep.subr.mxu0 %v287_v4  ;;  %s1502_s17 = scalar_lea.vmem %s2517_s2, %s1250_s23  ;;  %v296_v4 = vld [vmem:[%s2515_s0 + $0x3d0] sm:$0xff] }
   0xf   : > { %v279_v8 = vld [vmem:[%s2515_s0 + $0x348] sm:$0xff]  ;;  %673 = vmatprep.subr.mxu1 %v543_v5  ;;  %v278_v10 = vld [vmem:[%s2515_s0 + $0x340] sm:$0xff]  ;;  %603 = vmatpush1.msra.mxu0 %v286_v6  ;;  %v1514_v1 = vld [vmem:[%s1502_s17 + $0x10] sm:$0xff]  ;;  %v1271_v5 = vmov 0.0  }
  0x10   : > { %v535_v9 = vld [vmem:[%s2515_s0 + $0xb48] sm:$0xff]  ;;  %v534_v11 = vld [vmem:[%s2515_s0 + $0xb40] sm:$0xff]  ;;  %674 = vmatpush1.msra.mxu1 %v542_v7  ;;  %604 = vmatprep.subr.mxu0 %v279_v8  ;;  %v289_v7 = vld [vmem:[%s2515_s0 + $0x398] sm:$0xff] }
  0x11   : > { %v271_v12 = vld [vmem:[%s2515_s0 + $0x308] sm:$0xff]  ;;  %675 = vmatprep.subr.mxu1 %v535_v9  ;;  %v270_v14 = vld [vmem:[%s2515_s0 + $0x300] sm:$0xff]  ;;  %605 = vmatpush1.msra.mxu0 %v278_v10  ;;  %v288_v9 = vld [vmem:[%s2515_s0 + $0x390] sm:$0xff] }
  0x12   : > { %v527_v13 = vld [vmem:[%s2515_s0 + $0xb08] sm:$0xff]  ;;  %v526_v15 = vld [vmem:[%s2515_s0 + $0xb00] sm:$0xff]  ;;  %676 = vmatpush1.msra.mxu1 %v534_v11  ;;  %606 = vmatprep.subr.mxu0 %v271_v12  ;;  %v281_v11 = vld [vmem:[%s2515_s0 + $0x358] sm:$0xff] }
  0x13   : > { %v263_v16 = vld [vmem:[%s2515_s0 + $0x2c8] sm:$0xff]  ;;  %677 = vmatprep.subr.mxu1 %v527_v13  ;;  %v262_v18 = vld [vmem:[%s2515_s0 + $0x2c0] sm:$0xff]  ;;  %607 = vmatpush1.msra.mxu0 %v270_v14  ;;  %v280_v13 = vld [vmem:[%s2515_s0 + $0x350] sm:$0xff] }
  0x14   : > { %v519_v17 = vld [vmem:[%s2515_s0 + $0xac8] sm:$0xff]  ;;  %v518_v19 = vld [vmem:[%s2515_s0 + $0xac0] sm:$0xff]  ;;  %678 = vmatpush1.msra.mxu1 %v526_v15  ;;  %608 = vmatprep.subr.mxu0 %v263_v16  ;;  %v273_v15 = vld [vmem:[%s2515_s0 + $0x318] sm:$0xff] }
  0x15   : > { %v255_v20 = vld [vmem:[%s2515_s0 + $0x288] sm:$0xff]  ;;  %679 = vmatprep.subr.mxu1 %v519_v17  ;;  %v254_v22 = vld [vmem:[%s2515_s0 + $0x280] sm:$0xff]  ;;  %609 = vmatpush1.msra.mxu0 %v262_v18  ;;  %v272_v17 = vld [vmem:[%s2515_s0 + $0x310] sm:$0xff] }
  0x16   : > { %v511_v21 = vld [vmem:[%s2515_s0 + $0xa88] sm:$0xff]  ;;  %v510_v23 = vld [vmem:[%s2515_s0 + $0xa80] sm:$0xff]  ;;  %680 = vmatpush1.msra.mxu1 %v518_v19  ;;  %610 = vmatprep.subr.mxu0 %v255_v20  ;;  %v265_v19 = vld [vmem:[%s2515_s0 + $0x2d8] sm:$0xff] }
  0x17   : > { %v247_v24 = vld [vmem:[%s2515_s0 + $0x248] sm:$0xff]  ;;  %681 = vmatprep.subr.mxu1 %v511_v21  ;;  %v246_v26 = vld [vmem:[%s2515_s0 + $0x240] sm:$0xff]  ;;  %611 = vmatpush1.msra.mxu0 %v254_v22  ;;  %v264_v21 = vld [vmem:[%s2515_s0 + $0x2d0] sm:$0xff] }
  0x18   : > { %v503_v25 = vld [vmem:[%s2515_s0 + $0xa48] sm:$0xff]  ;;  %v502_v27 = vld [vmem:[%s2515_s0 + $0xa40] sm:$0xff]  ;;  %682 = vmatpush1.msra.mxu1 %v510_v23  ;;  %612 = vmatprep.subr.mxu0 %v247_v24  ;;  %v257_v23 = vld [vmem:[%s2515_s0 + $0x298] sm:$0xff] }
  0x19   : > { %v239_v28 = vld [vmem:[%s2515_s0 + $0x208] sm:$0xff]  ;;  %683 = vmatprep.subr.mxu1 %v503_v25  ;;  %v238_v30 = vld [vmem:[%s2515_s0 + $0x200] sm:$0xff]  ;;  %613 = vmatpush1.msra.mxu0 %v246_v26  ;;  %v256_v25 = vld [vmem:[%s2515_s0 + $0x290] sm:$0xff] }
  0x1a   : > { %v495_v29 = vld [vmem:[%s2515_s0 + $0xa08] sm:$0xff]  ;;  %v494_v31 = vld [vmem:[%s2515_s0 + $0xa00] sm:$0xff]  ;;  %684 = vmatpush1.msra.mxu1 %v502_v27  ;;  %614 = vmatprep.subr.mxu0 %v239_v28  ;;  %v249_v27 = vld [vmem:[%s2515_s0 + $0x258] sm:$0xff] }
  0x1b   : > { %v231_v32 = vld [vmem:[%s2515_s0 + $0x1c8] sm:$0xff]  ;;  %685 = vmatprep.subr.mxu1 %v495_v29  ;;  %v230_v34 = vld [vmem:[%s2515_s0 + $0x1c0] sm:$0xff]  ;;  %615 = vmatpush1.msra.mxu0 %v238_v30  ;;  %v248_v29 = vld [vmem:[%s2515_s0 + $0x250] sm:$0xff] }
  0x1c   : > { %v487_v33 = vld [vmem:[%s2515_s0 + $0x9c8] sm:$0xff]  ;;  %v486_v35 = vld [vmem:[%s2515_s0 + $0x9c0] sm:$0xff]  ;;  %686 = vmatpush1.msra.mxu1 %v494_v31  ;;  %616 = vmatprep.subr.mxu0 %v231_v32  ;;  %v241_v31 = vld [vmem:[%s2515_s0 + $0x218] sm:$0xff] }
  0x1d   : > { %v223_v36 = vld [vmem:[%s2515_s0 + $0x188] sm:$0xff]  ;;  %687 = vmatprep.subr.mxu1 %v487_v33  ;;  %v222_v38 = vld [vmem:[%s2515_s0 + $0x180] sm:$0xff]  ;;  %617 = vmatpush1.msra.mxu0 %v230_v34  ;;  %v240_v33 = vld [vmem:[%s2515_s0 + $0x210] sm:$0xff] }
  0x1e   : > { %v479_v37 = vld [vmem:[%s2515_s0 + $0x988] sm:$0xff]  ;;  %v478_v39 = vld [vmem:[%s2515_s0 + $0x980] sm:$0xff]  ;;  %688 = vmatpush1.msra.mxu1 %v486_v35  ;;  %618 = vmatprep.subr.mxu0 %v223_v36  ;;  %v233_v35 = vld [vmem:[%s2515_s0 + $0x1d8] sm:$0xff] }
  0x1f   : > { %v215_v40 = vld [vmem:[%s2515_s0 + $0x148] sm:$0xff]  ;;  %689 = vmatprep.subr.mxu1 %v479_v37  ;;  %v214_v42 = vld [vmem:[%s2515_s0 + $0x140] sm:$0xff]  ;;  %619 = vmatpush1.msra.mxu0 %v222_v38  ;;  %v232_v37 = vld [vmem:[%s2515_s0 + $0x1d0] sm:$0xff] }
  0x20   : > { %v471_v41 = vld [vmem:[%s2515_s0 + $0x948] sm:$0xff]  ;;  %v470_v43 = vld [vmem:[%s2515_s0 + $0x940] sm:$0xff]  ;;  %690 = vmatpush1.msra.mxu1 %v478_v39  ;;  %620 = vmatprep.subr.mxu0 %v215_v40  ;;  %v225_v39 = vld [vmem:[%s2515_s0 + $0x198] sm:$0xff] }
  0x21   : > { %v207_v44 = vld [vmem:[%s2515_s0 + $0x108] sm:$0xff]  ;;  %691 = vmatprep.subr.mxu1 %v471_v41  ;;  %v206_v46 = vld [vmem:[%s2515_s0 + $0x100] sm:$0xff]  ;;  %621 = vmatpush1.msra.mxu0 %v214_v42  ;;  %v224_v41 = vld [vmem:[%s2515_s0 + $0x190] sm:$0xff] }
  0x22   : > { %v463_v45 = vld [vmem:[%s2515_s0 + $0x908] sm:$0xff]  ;;  %v462_v47 = vld [vmem:[%s2515_s0 + $0x900] sm:$0xff]  ;;  %692 = vmatpush1.msra.mxu1 %v470_v43  ;;  %622 = vmatprep.subr.mxu0 %v207_v44  ;;  %v217_v43 = vld [vmem:[%s2515_s0 + $0x158] sm:$0xff] }
  0x23   : > { %v199_v48 = vld [vmem:[%s2515_s0 + $0xc8] sm:$0xff]  ;;  %693 = vmatprep.subr.mxu1 %v463_v45  ;;  %v198_v50 = vld [vmem:[%s2515_s0 + $0xc0] sm:$0xff]  ;;  %623 = vmatpush1.msra.mxu0 %v206_v46  ;;  %v216_v45 = vld [vmem:[%s2515_s0 + $0x150] sm:$0xff] }
  0x24   : > { %v455_v49 = vld [vmem:[%s2515_s0 + $0x8c8] sm:$0xff]  ;;  %v454_v51 = vld [vmem:[%s2515_s0 + $0x8c0] sm:$0xff]  ;;  %694 = vmatpush1.msra.mxu1 %v462_v47  ;;  %624 = vmatprep.subr.mxu0 %v199_v48  ;;  %v209_v47 = vld [vmem:[%s2515_s0 + $0x118] sm:$0xff] }
  0x25   : > { %v191_v52 = vld [vmem:[%s2515_s0 + $0x88] sm:$0xff]  ;;  %695 = vmatprep.subr.mxu1 %v455_v49  ;;  %v190_v54 = vld [vmem:[%s2515_s0 + $0x80] sm:$0xff]  ;;  %625 = vmatpush1.msra.mxu0 %v198_v50  ;;  %v208_v49 = vld [vmem:[%s2515_s0 + $0x110] sm:$0xff] }
  0x26   : > { %v447_v53 = vld [vmem:[%s2515_s0 + $0x888] sm:$0xff]  ;;  %v446_v55 = vld [vmem:[%s2515_s0 + $0x880] sm:$0xff]  ;;  %696 = vmatpush1.msra.mxu1 %v454_v51  ;;  %626 = vmatprep.subr.mxu0 %v191_v52  ;;  %v201_v51 = vld [vmem:[%s2515_s0 + $0xd8] sm:$0xff] }
  0x27   : > { %v183_v56 = vld [vmem:[%s2515_s0 + $0x48] sm:$0xff]  ;;  %697 = vmatprep.subr.mxu1 %v447_v53  ;;  %v182_v58 = vld [vmem:[%s2515_s0 + $0x40] sm:$0xff]  ;;  %627 = vmatpush1.msra.mxu0 %v190_v54  ;;  %v200_v53 = vld [vmem:[%s2515_s0 + $0xd0] sm:$0xff] }
  0x28   : > { %v439_v57 = vld [vmem:[%s2515_s0 + $0x848] sm:$0xff]  ;;  %v438_v59 = vld [vmem:[%s2515_s0 + $0x840] sm:$0xff]  ;;  %698 = vmatpush1.msra.mxu1 %v446_v55  ;;  %628 = vmatprep.subr.mxu0 %v183_v56  ;;  %v193_v55 = vld [vmem:[%s2515_s0 + $0x98] sm:$0xff] }
  0x29   : > { %v175_v60 = vld [vmem:[%s2515_s0 + $0x8] sm:$0xff]  ;;  %699 = vmatprep.subr.mxu1 %v439_v57  ;;  %v174_v62 = vld [vmem:[%s2515_s0] sm:$0xff]  ;;  %629 = vmatpush1.msra.mxu0 %v182_v58  ;;  %v192_v57 = vld [vmem:[%s2515_s0 + $0x90] sm:$0xff] }
  0x2a   : > { %v431_v61 = vld [vmem:[%s2515_s0 + $0x808] sm:$0xff]  ;;  %v430_v63 = vld [vmem:[%s2515_s0 + $0x800] sm:$0xff]  ;;  %700 = vmatpush1.msra.mxu1 %v438_v59  ;;  %630 = vmatprep.subr.mxu0 %v175_v60  ;;  %v185_v59 = vld [vmem:[%s2515_s0 + $0x58] sm:$0xff] }
  0x2b   : > { %v423_v0 = vld [vmem:[%s2515_s0 + $0x7c8] sm:$0xff]  ;;  %701 = vmatprep.subr.mxu1 %v431_v61  ;;  %631 = vmatpush1.msra.mxu0 %v174_v62  ;;  %v422_v3 = vld [vmem:[%s2515_s0 + $0x7c0] sm:$0xff]  ;;  %v184_v61 = vld [vmem:[%s2515_s0 + $0x50] sm:$0xff] }
  0x2c   : > { %702 = vmatpush1.msra.mxu1 %v430_v63  ;;  %735 = vmatprep.mubr.f32.mxu1 %v1271_v5  ;;  %v415_v6 = vld [vmem:[%s2515_s0 + $0x788] sm:$0xff]  ;;  %v414_v8 = vld [vmem:[%s2515_s0 + $0x780] sm:$0xff]  ;;  %v177_v63 = vld [vmem:[%s2515_s0 + $0x18] sm:$0xff] }
  0x2d   : > { %632 = vmatprep.subr.mxu0 %v423_v0  ;;  %736 = vmatmul.mubr.f32.vlgmr.msra.gmra.mxu1 %v1514_v1  ;;  %v407_v10 = vld [vmem:[%s2515_s0 + $0x748] sm:$0xff]  ;;  %v406_v12 = vld [vmem:[%s2515_s0 + $0x740] sm:$0xff] }
  0x2e   : > { %742 = vmatprep.subr.mxu1 %v297_v2  ;;  %633 = vmatpush2.msra.mxu0 %v422_v3  ;;  %v399_v14 = vld [vmem:[%s2515_s0 + $0x708] sm:$0xff]  ;;  %v398_v16 = vld [vmem:[%s2515_s0 + $0x700] sm:$0xff]  ;;  %v176_v3 = vld [vmem:[%s2515_s0 + $0x10] sm:$0xff] }
  0x2f   : > { %743 = vmatpush1.msra.mxu1 %v296_v4  ;;  %634 = vmatprep.subr.mxu0 %v415_v6  ;;  %v391_v18 = vld [vmem:[%s2515_s0 + $0x6c8] sm:$0xff]  ;;  %v390_v20 = vld [vmem:[%s2515_s0 + $0x6c0] sm:$0xff]  ;;  %v425_v6 = vld [vmem:[%s2515_s0 + $0x7d8] sm:$0xff] }
  0x30   : > { %744 = vmatprep.subr.mxu1 %v289_v7  ;;  %635 = vmatpush2.msra.mxu0 %v414_v8  ;;  %v383_v22 = vld [vmem:[%s2515_s0 + $0x688] sm:$0xff]  ;;  %v382_v24 = vld [vmem:[%s2515_s0 + $0x680] sm:$0xff]  ;;  %v553_v7 = vld [vmem:[%s2515_s0 + $0xbd8] sm:$0xff] }
  0x31   : > { %745 = vmatpush1.msra.mxu1 %v288_v9  ;;  %636 = vmatprep.subr.mxu0 %v407_v10  ;;  %v375_v26 = vld [vmem:[%s2515_s0 + $0x648] sm:$0xff]  ;;  %v374_v28 = vld [vmem:[%s2515_s0 + $0x640] sm:$0xff]  ;;  %v424_v8 = vld [vmem:[%s2515_s0 + $0x7d0] sm:$0xff] }
  0x32   : > { %746 = vmatprep.subr.mxu1 %v281_v11  ;;  %637 = vmatpush2.msra.mxu0 %v406_v12  ;;  %v367_v30 = vld [vmem:[%s2515_s0 + $0x608] sm:$0xff]  ;;  %v366_v32 = vld [vmem:[%s2515_s0 + $0x600] sm:$0xff]  ;;  %v552_v9 = vld [vmem:[%s2515_s0 + $0xbd0] sm:$0xff] }
  0x33   : > { %747 = vmatpush1.msra.mxu1 %v280_v13  ;;  %638 = vmatprep.subr.mxu0 %v399_v14  ;;  %v359_v34 = vld [vmem:[%s2515_s0 + $0x5c8] sm:$0xff]  ;;  %v358_v36 = vld [vmem:[%s2515_s0 + $0x5c0] sm:$0xff]  ;;  %v417_v10 = vld [vmem:[%s2515_s0 + $0x798] sm:$0xff] }
  0x34   : > { %748 = vmatprep.subr.mxu1 %v273_v15  ;;  %639 = vmatpush2.msra.mxu0 %v398_v16  ;;  %v351_v38 = vld [vmem:[%s2515_s0 + $0x588] sm:$0xff]  ;;  %v350_v40 = vld [vmem:[%s2515_s0 + $0x580] sm:$0xff]  ;;  %v545_v11 = vld [vmem:[%s2515_s0 + $0xb98] sm:$0xff] }
  0x35   : > { %749 = vmatpush1.msra.mxu1 %v272_v17  ;;  %640 = vmatprep.subr.mxu0 %v391_v18  ;;  %v343_v42 = vld [vmem:[%s2515_s0 + $0x548] sm:$0xff]  ;;  %v342_v44 = vld [vmem:[%s2515_s0 + $0x540] sm:$0xff]  ;;  %v416_v12 = vld [vmem:[%s2515_s0 + $0x790] sm:$0xff] }
  0x36   : > { %750 = vmatprep.subr.mxu1 %v265_v19  ;;  %641 = vmatpush2.msra.mxu0 %v390_v20  ;;  %v335_v46 = vld [vmem:[%s2515_s0 + $0x508] sm:$0xff]  ;;  %v334_v48 = vld [vmem:[%s2515_s0 + $0x500] sm:$0xff]  ;;  %v544_v13 = vld [vmem:[%s2515_s0 + $0xb90] sm:$0xff] }
  0x37   : > { %751 = vmatpush1.msra.mxu1 %v264_v21  ;;  %642 = vmatprep.subr.mxu0 %v383_v22  ;;  %v327_v50 = vld [vmem:[%s2515_s0 + $0x4c8] sm:$0xff]  ;;  %v326_v52 = vld [vmem:[%s2515_s0 + $0x4c0] sm:$0xff]  ;;  %v409_v14 = vld [vmem:[%s2515_s0 + $0x758] sm:$0xff] }
  0x38   : > { %752 = vmatprep.subr.mxu1 %v257_v23  ;;  %643 = vmatpush2.msra.mxu0 %v382_v24  ;;  %v319_v54 = vld [vmem:[%s2515_s0 + $0x488] sm:$0xff]  ;;  %v318_v56 = vld [vmem:[%s2515_s0 + $0x480] sm:$0xff]  ;;  %v537_v15 = vld [vmem:[%s2515_s0 + $0xb58] sm:$0xff] }
  0x39   : > { %753 = vmatpush1.msra.mxu1 %v256_v25  ;;  %644 = vmatprep.subr.mxu0 %v375_v26  ;;  %v311_v58 = vld [vmem:[%s2515_s0 + $0x448] sm:$0xff]  ;;  %v310_v60 = vld [vmem:[%s2515_s0 + $0x440] sm:$0xff]  ;;  %v408_v16 = vld [vmem:[%s2515_s0 + $0x750] sm:$0xff] }
  0x3a   : > { %754 = vmatprep.subr.mxu1 %v249_v27  ;;  %645 = vmatpush2.msra.mxu0 %v374_v28  ;;  %v303_v62 = vld [vmem:[%s2515_s0 + $0x408] sm:$0xff]  ;;  %v302_v0 = vld [vmem:[%s2515_s0 + $0x400] sm:$0xff]  ;;  %v536_v17 = vld [vmem:[%s2515_s0 + $0xb50] sm:$0xff] }
  0x3b   : > { %755 = vmatpush1.msra.mxu1 %v248_v29  ;;  %646 = vmatprep.subr.mxu0 %v367_v30  ;;  %v1705_v2 = vld [vmem:[%s1502_s17 + $0x8] sm:$0xff]  ;;  %v1711_v4 = vld [vmem:[%s1502_s17] sm:$0xff]  ;;  %v401_v18 = vld [vmem:[%s2515_s0 + $0x718] sm:$0xff] }
  0x3c   : > { %756 = vmatprep.subr.mxu1 %v241_v31  ;;  %647 = vmatpush2.msra.mxu0 %v366_v32  ;;  %v529_v19 = vld [vmem:[%s2515_s0 + $0xb18] sm:$0xff]  ;;  %v400_v20 = vld [vmem:[%s2515_s0 + $0x710] sm:$0xff] }
  0x3d   : > { %757 = vmatpush1.msra.mxu1 %v240_v33  ;;  %648 = vmatprep.subr.mxu0 %v359_v34  ;;  %v528_v21 = vld [vmem:[%s2515_s0 + $0xb10] sm:$0xff]  ;;  %v393_v22 = vld [vmem:[%s2515_s0 + $0x6d8] sm:$0xff] }
  0x3e   : > { %758 = vmatprep.subr.mxu1 %v233_v35  ;;  %649 = vmatpush2.msra.mxu0 %v358_v36  ;;  %v521_v23 = vld [vmem:[%s2515_s0 + $0xad8] sm:$0xff]  ;;  %v392_v24 = vld [vmem:[%s2515_s0 + $0x6d0] sm:$0xff] }
  0x3f   : > { %759 = vmatpush1.msra.mxu1 %v232_v37  ;;  %650 = vmatprep.subr.mxu0 %v351_v38  ;;  %v520_v25 = vld [vmem:[%s2515_s0 + $0xad0] sm:$0xff]  ;;  %v385_v26 = vld [vmem:[%s2515_s0 + $0x698] sm:$0xff] }
  0x40   : > { %760 = vmatprep.subr.mxu1 %v225_v39  ;;  %651 = vmatpush2.msra.mxu0 %v350_v40  ;;  %v513_v27 = vld [vmem:[%s2515_s0 + $0xa98] sm:$0xff]  ;;  %v384_v28 = vld [vmem:[%s2515_s0 + $0x690] sm:$0xff] }
  0x41   : > { %761 = vmatpush1.msra.mxu1 %v224_v41  ;;  %652 = vmatprep.subr.mxu0 %v343_v42  ;;  %v512_v29 = vld [vmem:[%s2515_s0 + $0xa90] sm:$0xff]  ;;  %v377_v30 = vld [vmem:[%s2515_s0 + $0x658] sm:$0xff] }
  0x42   : > { %762 = vmatprep.subr.mxu1 %v217_v43  ;;  %653 = vmatpush2.msra.mxu0 %v342_v44  ;;  %v505_v31 = vld [vmem:[%s2515_s0 + $0xa58] sm:$0xff]  ;;  %v376_v32 = vld [vmem:[%s2515_s0 + $0x650] sm:$0xff] }
  0x43   : > { %763 = vmatpush1.msra.mxu1 %v216_v45  ;;  %654 = vmatprep.subr.mxu0 %v335_v46  ;;  %v504_v33 = vld [vmem:[%s2515_s0 + $0xa50] sm:$0xff]  ;;  %v369_v34 = vld [vmem:[%s2515_s0 + $0x618] sm:$0xff] }
  0x44   : > { %764 = vmatprep.subr.mxu1 %v209_v47  ;;  %655 = vmatpush2.msra.mxu0 %v334_v48  ;;  %v497_v35 = vld [vmem:[%s2515_s0 + $0xa18] sm:$0xff]  ;;  %v368_v36 = vld [vmem:[%s2515_s0 + $0x610] sm:$0xff] }
  0x45   : > { %765 = vmatpush1.msra.mxu1 %v208_v49  ;;  %656 = vmatprep.subr.mxu0 %v327_v50  ;;  %v496_v37 = vld [vmem:[%s2515_s0 + $0xa10] sm:$0xff]  ;;  %v361_v38 = vld [vmem:[%s2515_s0 + $0x5d8] sm:$0xff] }
  0x46   : > { %766 = vmatprep.subr.mxu1 %v201_v51  ;;  %657 = vmatpush2.msra.mxu0 %v326_v52  ;;  %v489_v39 = vld [vmem:[%s2515_s0 + $0x9d8] sm:$0xff]  ;;  %v360_v40 = vld [vmem:[%s2515_s0 + $0x5d0] sm:$0xff] }
  0x47   : > { %767 = vmatpush1.msra.mxu1 %v200_v53  ;;  %658 = vmatprep.subr.mxu0 %v319_v54  ;;  %v488_v41 = vld [vmem:[%s2515_s0 + $0x9d0] sm:$0xff]  ;;  %v353_v42 = vld [vmem:[%s2515_s0 + $0x598] sm:$0xff] }
  0x48   : > { %768 = vmatprep.subr.mxu1 %v193_v55  ;;  %659 = vmatpush2.msra.mxu0 %v318_v56  ;;  %v481_v43 = vld [vmem:[%s2515_s0 + $0x998] sm:$0xff]  ;;  %v352_v44 = vld [vmem:[%s2515_s0 + $0x590] sm:$0xff] }
  0x49   : > { %769 = vmatpush1.msra.mxu1 %v192_v57  ;;  %660 = vmatprep.subr.mxu0 %v311_v58  ;;  %v480_v45 = vld [vmem:[%s2515_s0 + $0x990] sm:$0xff]  ;;  %v345_v46 = vld [vmem:[%s2515_s0 + $0x558] sm:$0xff] }
  0x4a   : > { %770 = vmatprep.subr.mxu1 %v185_v59  ;;  %661 = vmatpush2.msra.mxu0 %v310_v60  ;;  %v473_v47 = vld [vmem:[%s2515_s0 + $0x958] sm:$0xff]  ;;  %v344_v48 = vld [vmem:[%s2515_s0 + $0x550] sm:$0xff] }
  0x4b   : > { %771 = vmatpush1.msra.mxu1 %v184_v61  ;;  %662 = vmatprep.subr.mxu0 %v303_v62  ;;  %v472_v49 = vld [vmem:[%s2515_s0 + $0x950] sm:$0xff]  ;;  %v337_v50 = vld [vmem:[%s2515_s0 + $0x518] sm:$0xff] }
  0x4c   : > { %772 = vmatprep.subr.mxu1 %v177_v63  ;;  %663 = vmatpush2.msra.mxu0 %v302_v0  ;;  %v465_v51 = vld [vmem:[%s2515_s0 + $0x918] sm:$0xff]  ;;  %v336_v52 = vld [vmem:[%s2515_s0 + $0x510] sm:$0xff] }
  0x4d   : > { %664 = vmatprep.mubr.f32.mxu0 %v1705_v2  ;;  %773 = vmatpush1.msra.mxu1 %v176_v3  ;;  %v464_v53 = vld [vmem:[%s2515_s0 + $0x910] sm:$0xff]  ;;  %v329_v54 = vld [vmem:[%s2515_s0 + $0x4d8] sm:$0xff] }
  0x4e   : > { %665 = vmatmul.mubr.f32.vlgmr.msra.gmra.mxu0 %v1711_v4  ;;  %774 = vmatprep.subr.mxu1 %v425_v6  ;;  %v457_v55 = vld [vmem:[%s2515_s0 + $0x8d8] sm:$0xff]  ;;  %v328_v56 = vld [vmem:[%s2515_s0 + $0x4d0] sm:$0xff] }
  0x4f   : > { %813 = vmatprep.subr.mxu0 %v553_v7  ;;  %775 = vmatpush2.msra.mxu1 %v424_v8  ;;  %v456_v57 = vld [vmem:[%s2515_s0 + $0x8d0] sm:$0xff]  ;;  %v321_v58 = vld [vmem:[%s2515_s0 + $0x498] sm:$0xff] }
  0x50   : > { %814 = vmatpush1.msra.mxu0 %v552_v9  ;;  %776 = vmatprep.subr.mxu1 %v417_v10  ;;  %v449_v59 = vld [vmem:[%s2515_s0 + $0x898] sm:$0xff]  ;;  %v320_v60 = vld [vmem:[%s2515_s0 + $0x490] sm:$0xff]  ;;  %v299_v10 = vld [vmem:[%s2515_s0 + $0x3e8] sm:$0xff] }
  0x51   : > { %815 = vmatprep.subr.mxu0 %v545_v11  ;;  %777 = vmatpush2.msra.mxu1 %v416_v12  ;;  %v448_v61 = vld [vmem:[%s2515_s0 + $0x890] sm:$0xff]  ;;  %v313_v62 = vld [vmem:[%s2515_s0 + $0x458] sm:$0xff]  ;;  %v555_v11 = vld [vmem:[%s2515_s0 + $0xbe8] sm:$0xff] }
  0x52   : > { %816 = vmatpush1.msra.mxu0 %v544_v13  ;;  %778 = vmatprep.subr.mxu1 %v409_v14  ;;  %v441_v63 = vld [vmem:[%s2515_s0 + $0x858] sm:$0xff]  ;;  %v312_v0 = vld [vmem:[%s2515_s0 + $0x450] sm:$0xff]  ;;  %v298_v12 = vld [vmem:[%s2515_s0 + $0x3e0] sm:$0xff] }
  0x53   : > { %817 = vmatprep.subr.mxu0 %v537_v15  ;;  %779 = vmatpush2.msra.mxu1 %v408_v16  ;;  %v440_v3 = vld [vmem:[%s2515_s0 + $0x850] sm:$0xff]  ;;  %v305_v6 = vld [vmem:[%s2515_s0 + $0x418] sm:$0xff]  ;;  %v554_v13 = vld [vmem:[%s2515_s0 + $0xbe0] sm:$0xff] }
  0x54   : > { %818 = vmatpush1.msra.mxu0 %v536_v17  ;;  %780 = vmatprep.subr.mxu1 %v401_v18  ;;  %v433_v7 = vld [vmem:[%s2515_s0 + $0x818] sm:$0xff]  ;;  %v304_v8 = vld [vmem:[%s2515_s0 + $0x410] sm:$0xff]  ;;  %v291_v14 = vld [vmem:[%s2515_s0 + $0x3a8] sm:$0xff] }
  0x55   : > { %819 = vmatprep.subr.mxu0 %v529_v19  ;;  %781 = vmatpush2.msra.mxu1 %v400_v20  ;;  %v432_v9 = vld [vmem:[%s2515_s0 + $0x810] sm:$0xff]  ;;  %v547_v15 = vld [vmem:[%s2515_s0 + $0xba8] sm:$0xff]  ;;  %v290_v16 = vld [vmem:[%s2515_s0 + $0x3a0] sm:$0xff] }
  0x56   : > { %820 = vmatpush1.msra.mxu0 %v528_v21  ;;  %782 = vmatprep.subr.mxu1 %v393_v22  ;;  %v546_v17 = vld [vmem:[%s2515_s0 + $0xba0] sm:$0xff]  ;;  %v283_v18 = vld [vmem:[%s2515_s0 + $0x368] sm:$0xff] }
  0x57   : > { %821 = vmatprep.subr.mxu0 %v521_v23  ;;  %783 = vmatpush2.msra.mxu1 %v392_v24  ;;  %v539_v19 = vld [vmem:[%s2515_s0 + $0xb68] sm:$0xff]  ;;  %v282_v20 = vld [vmem:[%s2515_s0 + $0x360] sm:$0xff] }
  0x58   : > { %822 = vmatpush1.msra.mxu0 %v520_v25  ;;  %784 = vmatprep.subr.mxu1 %v385_v26  ;;  %v538_v21 = vld [vmem:[%s2515_s0 + $0xb60] sm:$0xff]  ;;  %v275_v22 = vld [vmem:[%s2515_s0 + $0x328] sm:$0xff] }
  0x59   : > { %823 = vmatprep.subr.mxu0 %v513_v27  ;;  %785 = vmatpush2.msra.mxu1 %v384_v28  ;;  %v531_v23 = vld [vmem:[%s2515_s0 + $0xb28] sm:$0xff]  ;;  %v274_v24 = vld [vmem:[%s2515_s0 + $0x320] sm:$0xff] }
  0x5a   : > { %824 = vmatpush1.msra.mxu0 %v512_v29  ;;  %786 = vmatprep.subr.mxu1 %v377_v30  ;;  %v530_v25 = vld [vmem:[%s2515_s0 + $0xb20] sm:$0xff]  ;;  %v267_v26 = vld [vmem:[%s2515_s0 + $0x2e8] sm:$0xff] }
  0x5b   : > { %825 = vmatprep.subr.mxu0 %v505_v31  ;;  %787 = vmatpush2.msra.mxu1 %v376_v32  ;;  %v523_v27 = vld [vmem:[%s2515_s0 + $0xae8] sm:$0xff]  ;;  %v266_v28 = vld [vmem:[%s2515_s0 + $0x2e0] sm:$0xff] }
  0x5c   : > { %826 = vmatpush1.msra.mxu0 %v504_v33  ;;  %788 = vmatprep.subr.mxu1 %v369_v34  ;;  %v522_v29 = vld [vmem:[%s2515_s0 + $0xae0] sm:$0xff]  ;;  %v259_v30 = vld [vmem:[%s2515_s0 + $0x2a8] sm:$0xff] }
  0x5d   : > { %827 = vmatprep.subr.mxu0 %v497_v35  ;;  %789 = vmatpush2.msra.mxu1 %v368_v36  ;;  %v515_v31 = vld [vmem:[%s2515_s0 + $0xaa8] sm:$0xff]  ;;  %v258_v32 = vld [vmem:[%s2515_s0 + $0x2a0] sm:$0xff] }
  0x5e   : > { %828 = vmatpush1.msra.mxu0 %v496_v37  ;;  %790 = vmatprep.subr.mxu1 %v361_v38  ;;  %v514_v33 = vld [vmem:[%s2515_s0 + $0xaa0] sm:$0xff]  ;;  %v251_v34 = vld [vmem:[%s2515_s0 + $0x268] sm:$0xff] }
  0x5f   : > { %829 = vmatprep.subr.mxu0 %v489_v39  ;;  %791 = vmatpush2.msra.mxu1 %v360_v40  ;;  %v507_v35 = vld [vmem:[%s2515_s0 + $0xa68] sm:$0xff]  ;;  %v250_v36 = vld [vmem:[%s2515_s0 + $0x260] sm:$0xff] }
  0x60   : > { %830 = vmatpush1.msra.mxu0 %v488_v41  ;;  %792 = vmatprep.subr.mxu1 %v353_v42  ;;  %v506_v37 = vld [vmem:[%s2515_s0 + $0xa60] sm:$0xff]  ;;  %v243_v38 = vld [vmem:[%s2515_s0 + $0x228] sm:$0xff] }
  0x61   : > { %831 = vmatprep.subr.mxu0 %v481_v43  ;;  %793 = vmatpush2.msra.mxu1 %v352_v44  ;;  %v499_v39 = vld [vmem:[%s2515_s0 + $0xa28] sm:$0xff]  ;;  %v242_v40 = vld [vmem:[%s2515_s0 + $0x220] sm:$0xff] }
  0x62   : > { %832 = vmatpush1.msra.mxu0 %v480_v45  ;;  %794 = vmatprep.subr.mxu1 %v345_v46  ;;  %v498_v41 = vld [vmem:[%s2515_s0 + $0xa20] sm:$0xff]  ;;  %v235_v42 = vld [vmem:[%s2515_s0 + $0x1e8] sm:$0xff] }
  0x63   : > { %833 = vmatprep.subr.mxu0 %v473_v47  ;;  %795 = vmatpush2.msra.mxu1 %v344_v48  ;;  %v491_v43 = vld [vmem:[%s2515_s0 + $0x9e8] sm:$0xff]  ;;  %v234_v44 = vld [vmem:[%s2515_s0 + $0x1e0] sm:$0xff] }
  0x64   : > { %834 = vmatpush1.msra.mxu0 %v472_v49  ;;  %796 = vmatprep.subr.mxu1 %v337_v50  ;;  %v490_v45 = vld [vmem:[%s2515_s0 + $0x9e0] sm:$0xff]  ;;  %v227_v46 = vld [vmem:[%s2515_s0 + $0x1a8] sm:$0xff] }
  0x65   : > { %835 = vmatprep.subr.mxu0 %v465_v51  ;;  %797 = vmatpush2.msra.mxu1 %v336_v52  ;;  %v483_v47 = vld [vmem:[%s2515_s0 + $0x9a8] sm:$0xff]  ;;  %v226_v48 = vld [vmem:[%s2515_s0 + $0x1a0] sm:$0xff] }
  0x66   : > { %836 = vmatpush1.msra.mxu0 %v464_v53  ;;  %798 = vmatprep.subr.mxu1 %v329_v54  ;;  %v482_v49 = vld [vmem:[%s2515_s0 + $0x9a0] sm:$0xff]  ;;  %v219_v50 = vld [vmem:[%s2515_s0 + $0x168] sm:$0xff] }
  0x67   : > { %837 = vmatprep.subr.mxu0 %v457_v55  ;;  %799 = vmatpush2.msra.mxu1 %v328_v56  ;;  %v475_v51 = vld [vmem:[%s2515_s0 + $0x968] sm:$0xff]  ;;  %v218_v52 = vld [vmem:[%s2515_s0 + $0x160] sm:$0xff] }
  0x68   : > { %838 = vmatpush1.msra.mxu0 %v456_v57  ;;  %800 = vmatprep.subr.mxu1 %v321_v58  ;;  %v474_v53 = vld [vmem:[%s2515_s0 + $0x960] sm:$0xff]  ;;  %v211_v54 = vld [vmem:[%s2515_s0 + $0x128] sm:$0xff] }
  0x69   : > { %839 = vmatprep.subr.mxu0 %v449_v59  ;;  %801 = vmatpush2.msra.mxu1 %v320_v60  ;;  %v467_v55 = vld [vmem:[%s2515_s0 + $0x928] sm:$0xff]  ;;  %v210_v56 = vld [vmem:[%s2515_s0 + $0x120] sm:$0xff] }
  0x6a   : > { %840 = vmatpush1.msra.mxu0 %v448_v61  ;;  %802 = vmatprep.subr.mxu1 %v313_v62  ;;  %v466_v57 = vld [vmem:[%s2515_s0 + $0x920] sm:$0xff]  ;;  %v203_v58 = vld [vmem:[%s2515_s0 + $0xe8] sm:$0xff] }
  0x6b   : > { %841 = vmatprep.subr.mxu0 %v441_v63  ;;  %803 = vmatpush2.msra.mxu1 %v312_v0  ;;  %v459_v59 = vld [vmem:[%s2515_s0 + $0x8e8] sm:$0xff]  ;;  %v202_v60 = vld [vmem:[%s2515_s0 + $0xe0] sm:$0xff] }
  0x6c   : > { %842 = vmatpush1.msra.mxu0 %v440_v3  ;;  %804 = vmatprep.subr.mxu1 %v305_v6  ;;  %v458_v61 = vld [vmem:[%s2515_s0 + $0x8e0] sm:$0xff]  ;;  %v195_v62 = vld [vmem:[%s2515_s0 + $0xa8] sm:$0xff] }
  0x6d   : > { %843 = vmatprep.subr.mxu0 %v433_v7  ;;  %805 = vmatpush2.msra.mxu1 %v304_v8  ;;  %v451_v63 = vld [vmem:[%s2515_s0 + $0x8a8] sm:$0xff]  ;;  %v194_v0 = vld [vmem:[%s2515_s0 + $0xa0] sm:$0xff] }
  0x6e   : > { %806 = vmatprep.mubr.f32.mxu1 %v1705_v2  ;;  %844 = vmatpush1.msra.mxu0 %v432_v9  ;;  %v450_v3 = vld [vmem:[%s2515_s0 + $0x8a0] sm:$0xff]  ;;  %v187_v6 = vld [vmem:[%s2515_s0 + $0x68] sm:$0xff] }
  0x6f   : > { %807 = vmatmul.mubr.f32.vlgmr.msra.gmra.mxu1 %v1711_v4  ;;  %877 = vmatprep.mubr.f32.mxu0 %v1271_v5  ;;  %v443_v7 = vld [vmem:[%s2515_s0 + $0x868] sm:$0xff]  ;;  %v186_v8 = vld [vmem:[%s2515_s0 + $0x60] sm:$0xff] }
  0x70   : > { %884 = vmatprep.subr.mxu0 %v299_v10  ;;  %955 = vmatprep.subr.mxu1 %v555_v11  ;;  %v442_v9 = vld [vmem:[%s2515_s0 + $0x860] sm:$0xff]  ;;  %v179_v10 = vld [vmem:[%s2515_s0 + $0x28] sm:$0xff] }
  0x71   : > { %878 = vmatmul.mubr.f32.vlgmr.msra.gmra.mxu0 %v1514_v1  ;;  %956 = vmatpush1.msra.mxu1 %v554_v13  ;;  %v435_v11 = vld [vmem:[%s2515_s0 + $0x828] sm:$0xff]  ;;  %v434_v13 = vld [vmem:[%s2515_s0 + $0x820] sm:$0xff] }
  0x72   : > { %885 = vmatpush1.msra.mxu0 %v298_v12  ;;  %957 = vmatprep.subr.mxu1 %v547_v15  ;;  %v178_v12 = vld [vmem:[%s2515_s0 + $0x20] sm:$0xff]  ;;  %v301_v15 = vld [vmem:[%s2515_s0 + $0x3f8] sm:$0xff] }
  0x73   : > { %886 = vmatprep.subr.mxu0 %v291_v14  ;;  %958 = vmatpush1.msra.mxu1 %v546_v17  ;;  %v427_v14 = vld [vmem:[%s2515_s0 + $0x7e8] sm:$0xff]  ;;  %v300_v17 = vld [vmem:[%s2515_s0 + $0x3f0] sm:$0xff] }
  0x74   : > { %887 = vmatpush1.msra.mxu0 %v290_v16  ;;  %959 = vmatprep.subr.mxu1 %v539_v19  ;;  %v426_v16 = vld [vmem:[%s2515_s0 + $0x7e0] sm:$0xff]  ;;  %v293_v19 = vld [vmem:[%s2515_s0 + $0x3b8] sm:$0xff] }
  0x75   : > { %888 = vmatprep.subr.mxu0 %v283_v18  ;;  %960 = vmatpush1.msra.mxu1 %v538_v21  ;;  %v419_v18 = vld [vmem:[%s2515_s0 + $0x7a8] sm:$0xff]  ;;  %v292_v21 = vld [vmem:[%s2515_s0 + $0x3b0] sm:$0xff] }
  0x76   : > { %889 = vmatpush1.msra.mxu0 %v282_v20  ;;  %961 = vmatprep.subr.mxu1 %v531_v23  ;;  %v418_v20 = vld [vmem:[%s2515_s0 + $0x7a0] sm:$0xff]  ;;  %v285_v23 = vld [vmem:[%s2515_s0 + $0x378] sm:$0xff] }
  0x77   : > { %890 = vmatprep.subr.mxu0 %v275_v22  ;;  %962 = vmatpush1.msra.mxu1 %v530_v25  ;;  %v411_v22 = vld [vmem:[%s2515_s0 + $0x768] sm:$0xff] }
  0x78   : > { %891 = vmatpush1.msra.mxu0 %v274_v24  ;;  %963 = vmatprep.subr.mxu1 %v523_v27  ;;  %v284_v24 = vld [vmem:[%s2515_s0 + $0x370] sm:$0xff]  ;;  %v403_v25 = vld [vmem:[%s2515_s0 + $0x728] sm:$0xff]  ;;  %v402_v27 = vld [vmem:[%s2515_s0 + $0x720] sm:$0xff] }
  0x79   : > { %892 = vmatprep.subr.mxu0 %v267_v26  ;;  %964 = vmatpush1.msra.mxu1 %v522_v29  ;;  %v277_v26 = vld [vmem:[%s2515_s0 + $0x338] sm:$0xff]  ;;  %v395_v29 = vld [vmem:[%s2515_s0 + $0x6e8] sm:$0xff] }
  0x7a   : > { %893 = vmatpush1.msra.mxu0 %v266_v28  ;;  %965 = vmatprep.subr.mxu1 %v515_v31  ;;  %v276_v28 = vld [vmem:[%s2515_s0 + $0x330] sm:$0xff]  ;;  %v394_v31 = vld [vmem:[%s2515_s0 + $0x6e0] sm:$0xff] }
  0x7b   : > { %894 = vmatprep.subr.mxu0 %v259_v30  ;;  %966 = vmatpush1.msra.mxu1 %v514_v33  ;;  %v269_v30 = vld [vmem:[%s2515_s0 + $0x2f8] sm:$0xff]  ;;  %v387_v33 = vld [vmem:[%s2515_s0 + $0x6a8] sm:$0xff] }
  0x7c   : > { %895 = vmatpush1.msra.mxu0 %v258_v32  ;;  %967 = vmatprep.subr.mxu1 %v507_v35  ;;  %v268_v32 = vld [vmem:[%s2515_s0 + $0x2f0] sm:$0xff]  ;;  %v386_v35 = vld [vmem:[%s2515_s0 + $0x6a0] sm:$0xff] }
  0x7d   : > { %896 = vmatprep.subr.mxu0 %v251_v34  ;;  %968 = vmatpush1.msra.mxu1 %v506_v37  ;;  %v261_v34 = vld [vmem:[%s2515_s0 + $0x2b8] sm:$0xff]  ;;  %v379_v37 = vld [vmem:[%s2515_s0 + $0x668] sm:$0xff] }
  0x7e   : > { %897 = vmatpush1.msra.mxu0 %v250_v36  ;;  %969 = vmatprep.subr.mxu1 %v499_v39  ;;  %v260_v36 = vld [vmem:[%s2515_s0 + $0x2b0] sm:$0xff]  ;;  %v378_v39 = vld [vmem:[%s2515_s0 + $0x660] sm:$0xff] }
  0x7f   : > { %898 = vmatprep.subr.mxu0 %v243_v38  ;;  %970 = vmatpush1.msra.mxu1 %v498_v41  ;;  %v253_v38 = vld [vmem:[%s2515_s0 + $0x278] sm:$0xff]  ;;  %v371_v41 = vld [vmem:[%s2515_s0 + $0x628] sm:$0xff] }
  0x80   : > { %899 = vmatpush1.msra.mxu0 %v242_v40  ;;  %971 = vmatprep.subr.mxu1 %v491_v43  ;;  %v252_v40 = vld [vmem:[%s2515_s0 + $0x270] sm:$0xff]  ;;  %v370_v43 = vld [vmem:[%s2515_s0 + $0x620] sm:$0xff] }
  0x81   : > { %900 = vmatprep.subr.mxu0 %v235_v42  ;;  %972 = vmatpush1.msra.mxu1 %v490_v45  ;;  %v245_v42 = vld [vmem:[%s2515_s0 + $0x238] sm:$0xff]  ;;  %v363_v45 = vld [vmem:[%s2515_s0 + $0x5e8] sm:$0xff] }
  0x82   : > { %901 = vmatpush1.msra.mxu0 %v234_v44  ;;  %973 = vmatprep.subr.mxu1 %v483_v47  ;;  %v244_v44 = vld [vmem:[%s2515_s0 + $0x230] sm:$0xff]  ;;  %v362_v47 = vld [vmem:[%s2515_s0 + $0x5e0] sm:$0xff] }
  0x83   : > { %902 = vmatprep.subr.mxu0 %v227_v46  ;;  %974 = vmatpush1.msra.mxu1 %v482_v49  ;;  %v237_v46 = vld [vmem:[%s2515_s0 + $0x1f8] sm:$0xff]  ;;  %v355_v49 = vld [vmem:[%s2515_s0 + $0x5a8] sm:$0xff] }
  0x84   : > { %903 = vmatpush1.msra.mxu0 %v226_v48  ;;  %975 = vmatprep.subr.mxu1 %v475_v51  ;;  %v236_v48 = vld [vmem:[%s2515_s0 + $0x1f0] sm:$0xff]  ;;  %v354_v51 = vld [vmem:[%s2515_s0 + $0x5a0] sm:$0xff] }
  0x85   : > { %904 = vmatprep.subr.mxu0 %v219_v50  ;;  %976 = vmatpush1.msra.mxu1 %v474_v53  ;;  %v229_v50 = vld [vmem:[%s2515_s0 + $0x1b8] sm:$0xff]  ;;  %v347_v53 = vld [vmem:[%s2515_s0 + $0x568] sm:$0xff] }
  0x86   : > { %905 = vmatpush1.msra.mxu0 %v218_v52  ;;  %977 = vmatprep.subr.mxu1 %v467_v55  ;;  %v228_v52 = vld [vmem:[%s2515_s0 + $0x1b0] sm:$0xff]  ;;  %v346_v55 = vld [vmem:[%s2515_s0 + $0x560] sm:$0xff] }
  0x87   : > { %906 = vmatprep.subr.mxu0 %v211_v54  ;;  %978 = vmatpush1.msra.mxu1 %v466_v57  ;;  %v221_v54 = vld [vmem:[%s2515_s0 + $0x178] sm:$0xff]  ;;  %v339_v57 = vld [vmem:[%s2515_s0 + $0x528] sm:$0xff] }
  0x88   : > { %907 = vmatpush1.msra.mxu0 %v210_v56  ;;  %979 = vmatprep.subr.mxu1 %v459_v59  ;;  %v220_v56 = vld [vmem:[%s2515_s0 + $0x170] sm:$0xff]  ;;  %v338_v59 = vld [vmem:[%s2515_s0 + $0x520] sm:$0xff] }
  0x89   : > { %908 = vmatprep.subr.mxu0 %v203_v58  ;;  %980 = vmatpush1.msra.mxu1 %v458_v61  ;;  %v213_v58 = vld [vmem:[%s2515_s0 + $0x138] sm:$0xff]  ;;  %v331_v61 = vld [vmem:[%s2515_s0 + $0x4e8] sm:$0xff] }
  0x8a   : > { %909 = vmatpush1.msra.mxu0 %v202_v60  ;;  %981 = vmatprep.subr.mxu1 %v451_v63  ;;  %v212_v60 = vld [vmem:[%s2515_s0 + $0x130] sm:$0xff]  ;;  %v330_v63 = vld [vmem:[%s2515_s0 + $0x4e0] sm:$0xff] }
  0x8b   : > { %910 = vmatprep.subr.mxu0 %v195_v62  ;;  %982 = vmatpush1.msra.mxu1 %v450_v3  ;;  %v205_v62 = vld [vmem:[%s2515_s0 + $0xf8] sm:$0xff]  ;;  %v323_v3 = vld [vmem:[%s2515_s0 + $0x4a8] sm:$0xff] }
  0x8c   : > { %911 = vmatpush1.msra.mxu0 %v194_v0  ;;  %983 = vmatprep.subr.mxu1 %v443_v7  ;;  %v204_v0 = vld [vmem:[%s2515_s0 + $0xf0] sm:$0xff]  ;;  %v322_v7 = vld [vmem:[%s2515_s0 + $0x4a0] sm:$0xff] }
  0x8d   : > { %912 = vmatprep.subr.mxu0 %v187_v6  ;;  %984 = vmatpush1.msra.mxu1 %v442_v9  ;;  %v197_v6 = vld [vmem:[%s2515_s0 + $0xb8] sm:$0xff]  ;;  %v315_v9 = vld [vmem:[%s2515_s0 + $0x468] sm:$0xff] }
  0x8e   : > { %913 = vmatpush1.msra.mxu0 %v186_v8  ;;  %985 = vmatprep.subr.mxu1 %v435_v11  ;;  %v196_v8 = vld [vmem:[%s2515_s0 + $0xb0] sm:$0xff]  ;;  %v314_v11 = vld [vmem:[%s2515_s0 + $0x460] sm:$0xff] }
  0x8f   : > { %914 = vmatprep.subr.mxu0 %v179_v10  ;;  %986 = vmatpush1.msra.mxu1 %v434_v13  ;;  %v189_v10 = vld [vmem:[%s2515_s0 + $0x78] sm:$0xff]  ;;  %v307_v13 = vld [vmem:[%s2515_s0 + $0x428] sm:$0xff] }
  0x90   : > { %915 = vmatpush1.msra.mxu0 %v178_v12  ;;  %1019 = vmatprep.mubr.f32.mxu1 %v1271_v5  ;;  %v188_v12 = vld [vmem:[%s2515_s0 + $0x70] sm:$0xff] }
  0x91   : > { %916 = vmatprep.subr.mxu0 %v427_v14  ;;  %1020 = vmatmul.mubr.f32.vlgmr.msra.gmra.mxu1 %v1514_v1  ;;  %v410_v1 = vld [vmem:[%s2515_s0 + $0x760] sm:$0xff]  ;;  %v181_v14 = vld [vmem:[%s2515_s0 + $0x38] sm:$0xff] }
  0x92   : > { %1026 = vmatprep.subr.mxu1 %v301_v15  ;;  %917 = vmatpush2.msra.mxu0 %v426_v16  ;;  %v306_v15 = vld [vmem:[%s2515_s0 + $0x420] sm:$0xff]  ;;  %v180_v16 = vld [vmem:[%s2515_s0 + $0x30] sm:$0xff] }
  0x93   : > { %1027 = vmatpush1.msra.mxu1 %v300_v17  ;;  %918 = vmatprep.subr.mxu0 %v419_v18  ;;  %v429_v17 = vld [vmem:[%s2515_s0 + $0x7f8] sm:$0xff] }
  0x94   : > { %1028 = vmatprep.subr.mxu1 %v293_v19  ;;  %919 = vmatpush2.msra.mxu0 %v418_v20  ;;  %v557_v18 = vld [vmem:[%s2515_s0 + $0xbf8] sm:$0xff]  ;;  %v428_v19 = vld [vmem:[%s2515_s0 + $0x7f0] sm:$0xff] }
  0x95   : > { %1029 = vmatpush1.msra.mxu1 %v292_v21  ;;  %920 = vmatprep.subr.mxu0 %v411_v22  ;;  %v556_v20 = vld [vmem:[%s2515_s0 + $0xbf0] sm:$0xff]  ;;  %v421_v21 = vld [vmem:[%s2515_s0 + $0x7b8] sm:$0xff] }
  0x96   : > { %1030 = vmatprep.subr.mxu1 %v285_v23  ;;  %921 = vmatpush2.msra.mxu0 %v410_v1  ;;  %v549_v22 = vld [vmem:[%s2515_s0 + $0xbb8] sm:$0xff]  ;;  %v548_v23 = vld [vmem:[%s2515_s0 + $0xbb0] sm:$0xff] }
  0x97   : > { %1031 = vmatpush1.msra.mxu1 %v284_v24  ;;  %922 = vmatprep.subr.mxu0 %v403_v25  ;;  %v541_v1 = vld [vmem:[%s2515_s0 + $0xb78] sm:$0xff]  ;;  %v412_v24 = vld [vmem:[%s2515_s0 + $0x770] sm:$0xff] }
  0x98   : > { %1032 = vmatprep.subr.mxu1 %v277_v26  ;;  %923 = vmatpush2.msra.mxu0 %v402_v27  ;;  %v540_v25 = vld [vmem:[%s2515_s0 + $0xb70] sm:$0xff]  ;;  %v405_v26 = vld [vmem:[%s2515_s0 + $0x738] sm:$0xff] }
  0x99   : > { %1033 = vmatpush1.msra.mxu1 %v276_v28  ;;  %924 = vmatprep.subr.mxu0 %v395_v29  ;;  %v533_v27 = vld [vmem:[%s2515_s0 + $0xb38] sm:$0xff]  ;;  %v404_v28 = vld [vmem:[%s2515_s0 + $0x730] sm:$0xff] }
  0x9a   : > { %1034 = vmatprep.subr.mxu1 %v269_v30  ;;  %925 = vmatpush2.msra.mxu0 %v394_v31  ;;  %v532_v29 = vld [vmem:[%s2515_s0 + $0xb30] sm:$0xff]  ;;  %v397_v30 = vld [vmem:[%s2515_s0 + $0x6f8] sm:$0xff] }
  0x9b   : > { %1035 = vmatpush1.msra.mxu1 %v268_v32  ;;  %926 = vmatprep.subr.mxu0 %v387_v33  ;;  %v525_v31 = vld [vmem:[%s2515_s0 + $0xaf8] sm:$0xff]  ;;  %v396_v32 = vld [vmem:[%s2515_s0 + $0x6f0] sm:$0xff] }
  0x9c   : > { %1036 = vmatprep.subr.mxu1 %v261_v34  ;;  %927 = vmatpush2.msra.mxu0 %v386_v35  ;;  %v524_v33 = vld [vmem:[%s2515_s0 + $0xaf0] sm:$0xff]  ;;  %v389_v34 = vld [vmem:[%s2515_s0 + $0x6b8] sm:$0xff] }
  0x9d   : > { %1037 = vmatpush1.msra.mxu1 %v260_v36  ;;  %928 = vmatprep.subr.mxu0 %v379_v37  ;;  %v517_v35 = vld [vmem:[%s2515_s0 + $0xab8] sm:$0xff]  ;;  %v388_v36 = vld [vmem:[%s2515_s0 + $0x6b0] sm:$0xff] }
  0x9e   : > { %1038 = vmatprep.subr.mxu1 %v253_v38  ;;  %929 = vmatpush2.msra.mxu0 %v378_v39  ;;  %v516_v37 = vld [vmem:[%s2515_s0 + $0xab0] sm:$0xff]  ;;  %v381_v38 = vld [vmem:[%s2515_s0 + $0x678] sm:$0xff] }
  0x9f   : > { %1039 = vmatpush1.msra.mxu1 %v252_v40  ;;  %930 = vmatprep.subr.mxu0 %v371_v41  ;;  %v509_v39 = vld [vmem:[%s2515_s0 + $0xa78] sm:$0xff]  ;;  %v380_v40 = vld [vmem:[%s2515_s0 + $0x670] sm:$0xff] }
  0xa0   : > { %1040 = vmatprep.subr.mxu1 %v245_v42  ;;  %931 = vmatpush2.msra.mxu0 %v370_v43  ;;  %v508_v41 = vld [vmem:[%s2515_s0 + $0xa70] sm:$0xff]  ;;  %v373_v42 = vld [vmem:[%s2515_s0 + $0x638] sm:$0xff] }
  0xa1   : > { %1041 = vmatpush1.msra.mxu1 %v244_v44  ;;  %932 = vmatprep.subr.mxu0 %v363_v45  ;;  %v501_v43 = vld [vmem:[%s2515_s0 + $0xa38] sm:$0xff]  ;;  %v372_v44 = vld [vmem:[%s2515_s0 + $0x630] sm:$0xff] }
  0xa2   : > { %1042 = vmatprep.subr.mxu1 %v237_v46  ;;  %933 = vmatpush2.msra.mxu0 %v362_v47  ;;  %v500_v45 = vld [vmem:[%s2515_s0 + $0xa30] sm:$0xff]  ;;  %v365_v46 = vld [vmem:[%s2515_s0 + $0x5f8] sm:$0xff] }
  0xa3   : > { %1043 = vmatpush1.msra.mxu1 %v236_v48  ;;  %934 = vmatprep.subr.mxu0 %v355_v49  ;;  %v493_v47 = vld [vmem:[%s2515_s0 + $0x9f8] sm:$0xff]  ;;  %v364_v48 = vld [vmem:[%s2515_s0 + $0x5f0] sm:$0xff] }
  0xa4   : > { %1044 = vmatprep.subr.mxu1 %v229_v50  ;;  %935 = vmatpush2.msra.mxu0 %v354_v51  ;;  %v492_v49 = vld [vmem:[%s2515_s0 + $0x9f0] sm:$0xff]  ;;  %v357_v50 = vld [vmem:[%s2515_s0 + $0x5b8] sm:$0xff] }
  0xa5   : > { %1045 = vmatpush1.msra.mxu1 %v228_v52  ;;  %936 = vmatprep.subr.mxu0 %v347_v53  ;;  %v485_v51 = vld [vmem:[%s2515_s0 + $0x9b8] sm:$0xff]  ;;  %v356_v52 = vld [vmem:[%s2515_s0 + $0x5b0] sm:$0xff] }
  0xa6   : > { %1046 = vmatprep.subr.mxu1 %v221_v54  ;;  %937 = vmatpush2.msra.mxu0 %v346_v55  ;;  %v484_v53 = vld [vmem:[%s2515_s0 + $0x9b0] sm:$0xff]  ;;  %v349_v54 = vld [vmem:[%s2515_s0 + $0x578] sm:$0xff] }
  0xa7   : > { %1047 = vmatpush1.msra.mxu1 %v220_v56  ;;  %938 = vmatprep.subr.mxu0 %v339_v57  ;;  %v477_v55 = vld [vmem:[%s2515_s0 + $0x978] sm:$0xff]  ;;  %v348_v56 = vld [vmem:[%s2515_s0 + $0x570] sm:$0xff] }
  0xa8   : > { %1048 = vmatprep.subr.mxu1 %v213_v58  ;;  %939 = vmatpush2.msra.mxu0 %v338_v59  ;;  %v476_v57 = vld [vmem:[%s2515_s0 + $0x970] sm:$0xff]  ;;  %v341_v58 = vld [vmem:[%s2515_s0 + $0x538] sm:$0xff] }
  0xa9   : > { %1049 = vmatpush1.msra.mxu1 %v212_v60  ;;  %940 = vmatprep.subr.mxu0 %v331_v61  ;;  %v469_v59 = vld [vmem:[%s2515_s0 + $0x938] sm:$0xff]  ;;  %v340_v60 = vld [vmem:[%s2515_s0 + $0x530] sm:$0xff] }
  0xaa   : > { %1050 = vmatprep.subr.mxu1 %v205_v62  ;;  %941 = vmatpush2.msra.mxu0 %v330_v63  ;;  %v468_v61 = vld [vmem:[%s2515_s0 + $0x930] sm:$0xff]  ;;  %v333_v62 = vld [vmem:[%s2515_s0 + $0x4f8] sm:$0xff] }
  0xab   : > { %1051 = vmatpush1.msra.mxu1 %v204_v0  ;;  %942 = vmatprep.subr.mxu0 %v323_v3  ;;  %v461_v63 = vld [vmem:[%s2515_s0 + $0x8f8] sm:$0xff]  ;;  %v332_v0 = vld [vmem:[%s2515_s0 + $0x4f0] sm:$0xff] }
  0xac   : > { %1052 = vmatprep.subr.mxu1 %v197_v6  ;;  %943 = vmatpush2.msra.mxu0 %v322_v7  ;;  %v460_v3 = vld [vmem:[%s2515_s0 + $0x8f0] sm:$0xff]  ;;  %v325_v6 = vld [vmem:[%s2515_s0 + $0x4b8] sm:$0xff] }
  0xad   : > { %1053 = vmatpush1.msra.mxu1 %v196_v8  ;;  %944 = vmatprep.subr.mxu0 %v315_v9  ;;  %v453_v7 = vld [vmem:[%s2515_s0 + $0x8b8] sm:$0xff]  ;;  %v324_v8 = vld [vmem:[%s2515_s0 + $0x4b0] sm:$0xff] }
  0xae   : > { %1054 = vmatprep.subr.mxu1 %v189_v10  ;;  %945 = vmatpush2.msra.mxu0 %v314_v11  ;;  %v452_v9 = vld [vmem:[%s2515_s0 + $0x8b0] sm:$0xff]  ;;  %v317_v10 = vld [vmem:[%s2515_s0 + $0x478] sm:$0xff] }
  0xaf   : > { %1055 = vmatpush1.msra.mxu1 %v188_v12  ;;  %946 = vmatprep.subr.mxu0 %v307_v13  ;;  %v445_v11 = vld [vmem:[%s2515_s0 + $0x878] sm:$0xff]  ;;  %v316_v12 = vld [vmem:[%s2515_s0 + $0x470] sm:$0xff] }
  0xb0   : > { %1056 = vmatprep.subr.mxu1 %v181_v14  ;;  %947 = vmatpush2.msra.mxu0 %v306_v15  ;;  %v444_v13 = vld [vmem:[%s2515_s0 + $0x870] sm:$0xff]  ;;  %v309_v14 = vld [vmem:[%s2515_s0 + $0x438] sm:$0xff] }
  0xb1   : > { %948 = vmatprep.mubr.f32.mxu0 %v1705_v2  ;;  %1057 = vmatpush1.msra.mxu1 %v180_v16  ;;  %v420_v2 = vld [vmem:[%s2515_s0 + $0x7b0] sm:$0xff]  ;;  %v437_v15 = vld [vmem:[%s2515_s0 + $0x838] sm:$0xff] }
  0xb2   : > { %949 = vmatmul.mubr.f32.vlgmr.msra.gmra.mxu0 %v1711_v4  ;;  %1058 = vmatprep.subr.mxu1 %v429_v17  ;;  %v413_v4 = vld [vmem:[%s2515_s0 + $0x778] sm:$0xff]  ;;  %v308_v16 = vld [vmem:[%s2515_s0 + $0x430] sm:$0xff] }
  0xb3   : > { %1097 = vmatprep.subr.mxu0 %v557_v18  ;;  %1059 = vmatpush2.msra.mxu1 %v428_v19  ;;  %v436_v17 = vld [vmem:[%s2515_s0 + $0x830] sm:$0xff]  ;;  %v1260_v18 = vld [vmem:[%s1502_s17 + $0x8] sm:$0xff]  ;;  %v1261_v19 = vld [vmem:[%s1502_s17] sm:$0xff] }
  0xb4   : > { %1098 = vmatpush1.msra.mxu0 %v556_v20  ;;  %1060 = vmatprep.subr.mxu1 %v421_v21  ;;  %v1262_v20 = vld [vmem:[%s1502_s17 + $0x10] sm:$0xff]  ;;  %v560_v21 = vlaneseq }
  0xb5   : > { %1099 = vmatprep.subr.mxu0 %v549_v22  ;;  %1061 = vmatpush2.msra.mxu1 %v420_v2 }
  0xb6   : > { %1100 = vmatpush1.msra.mxu0 %v548_v23  ;;  %1062 = vmatprep.subr.mxu1 %v413_v4  ;;  %v561_v22 = vshrl.u32 %v560_v21, 7  ;;  %v558_v23 = vld [vmem:[%s2516_s1] sm:$0xff] }
  0xb7   : > { %1101 = vmatprep.subr.mxu0 %v541_v1  ;;  %1063 = vmatpush2.msra.mxu1 %v412_v24 }
  0xb8   : > { %1102 = vmatpush1.msra.mxu0 %v540_v25  ;;  %1064 = vmatprep.subr.mxu1 %v405_v26  ;;  %v562_v2 = vsub.s32 0, %v561_v22  ;;  %v566_v4 = vsub.s32 1, %v561_v22 }
  0xb9   : > { %1103 = vmatprep.subr.mxu0 %v533_v27  ;;  %1065 = vmatpush2.msra.mxu1 %v404_v28 }
  0xba   : > { %1104 = vmatpush1.msra.mxu0 %v532_v29  ;;  %1066 = vmatprep.subr.mxu1 %v397_v30  ;;  %v563_v1 = vrot.slane %v558_v23, %v562_v2  ;;  %v567_v24 = vrot.slane %v558_v23, %v566_v4 }
  0xbb   : > { %1105 = vmatprep.subr.mxu0 %v525_v31  ;;  %1067 = vmatpush2.msra.mxu1 %v396_v32 }
  0xbc   : > { %1106 = vmatpush1.msra.mxu0 %v524_v33  ;;  %1068 = vmatprep.subr.mxu1 %v389_v34  ;;  %v570_v34 = vsub.s32 2, %v561_v22 }
  0xbd   : > { %1107 = vmatprep.subr.mxu0 %v517_v35  ;;  %1069 = vmatpush2.msra.mxu1 %v388_v36  ;;  %v574_v35 = vsub.s32 3, %v561_v22 }
  0xbe   : > { %1108 = vmatpush1.msra.mxu0 %v516_v37  ;;  %1070 = vmatprep.subr.mxu1 %v381_v38  ;;  %v571_v36 = vrot.slane %v558_v23, %v570_v34 }
  0xbf   : > { %1109 = vmatprep.subr.mxu0 %v509_v39  ;;  %1071 = vmatpush2.msra.mxu1 %v380_v40  ;;  %v575_v37 = vrot.slane %v558_v23, %v574_v35 }
  0xc0   : > { %1110 = vmatpush1.msra.mxu0 %v508_v41  ;;  %1072 = vmatprep.subr.mxu1 %v373_v42 }
  0xc1   : > { %1111 = vmatprep.subr.mxu0 %v501_v43  ;;  %1073 = vmatpush2.msra.mxu1 %v372_v44 }
  0xc2   : > { %1112 = vmatpush1.msra.mxu0 %v500_v45  ;;  %1074 = vmatprep.subr.mxu1 %v365_v46 }
  0xc3   : > { %1113 = vmatprep.subr.mxu0 %v493_v47  ;;  %1075 = vmatpush2.msra.mxu1 %v364_v48  ;;  %v578_v48 = vsub.s32 4, %v561_v22 }
  0xc4   : > { %1114 = vmatpush1.msra.mxu0 %v492_v49  ;;  %1076 = vmatprep.subr.mxu1 %v357_v50  ;;  %v582_v49 = vsub.s32 5, %v561_v22 }
  0xc5   : > { %1115 = vmatprep.subr.mxu0 %v485_v51  ;;  %1077 = vmatpush2.msra.mxu1 %v356_v52  ;;  %v579_v50 = vrot.slane %v558_v23, %v578_v48 }
  0xc6   : > { %1116 = vmatpush1.msra.mxu0 %v484_v53  ;;  %1078 = vmatprep.subr.mxu1 %v349_v54  ;;  %v583_v51 = vrot.slane %v558_v23, %v582_v49 }
  0xc7   : > { %1117 = vmatprep.subr.mxu0 %v477_v55  ;;  %1079 = vmatpush2.msra.mxu1 %v348_v56 }
  0xc8   : > { %1118 = vmatpush1.msra.mxu0 %v476_v57  ;;  %1080 = vmatprep.subr.mxu1 %v341_v58 }
  0xc9   : > { %1119 = vmatprep.subr.mxu0 %v469_v59  ;;  %1081 = vmatpush2.msra.mxu1 %v340_v60 }
  0xca   : > { %1120 = vmatpush1.msra.mxu0 %v468_v61  ;;  %1082 = vmatprep.subr.mxu1 %v333_v62  ;;  %v586_v62 = vsub.s32 6, %v561_v22 }
  0xcb   : > { %1121 = vmatprep.subr.mxu0 %v461_v63  ;;  %1083 = vmatpush2.msra.mxu1 %v332_v0  ;;  %v590_v63 = vsub.s32 7, %v561_v22 }
  0xcc   : > { %1122 = vmatpush1.msra.mxu0 %v460_v3  ;;  %1084 = vmatprep.subr.mxu1 %v325_v6  ;;  %v587_v0 = vrot.slane %v558_v23, %v586_v62 }
  0xcd   : > { %1123 = vmatprep.subr.mxu0 %v453_v7  ;;  %1085 = vmatpush2.msra.mxu1 %v324_v8  ;;  %v591_v3 = vrot.slane %v558_v23, %v590_v63 }
  0xce   : > { %1124 = vmatpush1.msra.mxu0 %v452_v9  ;;  %1086 = vmatprep.subr.mxu1 %v317_v10 }
  0xcf   : > { %1125 = vmatprep.subr.mxu0 %v445_v11  ;;  %1087 = vmatpush2.msra.mxu1 %v316_v12 }
  0xd0   : > { %1126 = vmatpush1.msra.mxu0 %v444_v13  ;;  %1088 = vmatprep.subr.mxu1 %v309_v14 }
  0xd1   : > { %1127 = vmatprep.subr.mxu0 %v437_v15  ;;  %1089 = vmatpush2.msra.mxu1 %v308_v16 }
  0xd2   : > { %1090 = vmatprep.mubr.f32.mxu1 %v1260_v18  ;;  %1128 = vmatpush1.msra.mxu0 %v436_v17 }
  0xd3   : > { %1161 = vmatprep.mubr.f32.mxu0 %v1271_v5  ;;  %1091 = vmatmul.mubr.f32.vlgmr.msra.gmra.mxu1 %v1261_v19 }
  0xd4   : > { %1162 = vmatmul.mubr.f32.vlgmr.msra.gmra.mxu0 %v1262_v20 }
  0xed   : > { %v737_v25 = vpop.f32.mrf.mxu1 }
  0xef   : > { %v739_v30 = vpop.f32.mrf.mxu1 }
 0x10e   : > { %v666_v26 = vpop.f32.mrf.mxu0 }
 0x10f   : > { %v667_v27 = vadd.f32 %v666_v26, %v563_v1 }
 0x110   : > { %v668_v28 = vpop.f32.mrf.mxu0 }
 0x111   : > { %v738_v5 = vadd.f32 %v737_v25, %v667_v27  ;;  %v669_v29 = vadd.f32 %v668_v28, %v567_v24 }
 0x113   : > { %v1168_v31 = vmax.f32 %v738_v5, 0.0  ;;  %v740_v32 = vadd.f32 %v739_v30, %v669_v29 }
 0x115   : > { %1176 = vst [vmem:[%s2502_s18] sm:$0xff] %v1168_v31  ;;  %v1169_v33 = vmax.f32 %v740_v32, 0.0 }
 0x117   : > { %1177 = vst [vmem:[%s2502_s18 + $0x8] sm:$0xff] %v1169_v33 }
 0x12f   : > { %v808_v38 = vpop.f32.mrf.mxu1 }
 0x130   : > { %v809_v39 = vadd.f32 %v808_v38, %v571_v36 }
 0x131   : > { %v879_v40 = vpop.f32.mrf.mxu0  ;;  %v810_v41 = vpop.f32.mrf.mxu1 }
 0x132   : > { %v880_v42 = vadd.f32 %v879_v40, %v809_v39  ;;  %v811_v43 = vadd.f32 %v810_v41, %v575_v37 }
 0x133   : > { %v881_v44 = vpop.f32.mrf.mxu0 }
 0x134   : > { %v1170_v45 = vmax.f32 %v880_v42, 0.0  ;;  %v882_v46 = vadd.f32 %v881_v44, %v811_v43 }
 0x136   : > { %1178 = vst [vmem:[%s2502_s18 + $0x10] sm:$0xff] %v1170_v45  ;;  %v1171_v47 = vmax.f32 %v882_v46, 0.0 }
 0x138   : > { %1179 = vst [vmem:[%s2502_s18 + $0x18] sm:$0xff] %v1171_v47 }
 0x151   : > { %v1021_v52 = vpop.f32.mrf.mxu1 }
 0x153   : > { %v1023_v58 = vpop.f32.mrf.mxu1 }
 0x172   : > { %v950_v53 = vpop.f32.mrf.mxu0 }
 0x173   : > { %v951_v54 = vadd.f32 %v950_v53, %v579_v50 }
 0x174   : > { %v952_v55 = vpop.f32.mrf.mxu0 }
 0x175   : > { %v1022_v56 = vadd.f32 %v1021_v52, %v951_v54  ;;  %v953_v57 = vadd.f32 %v952_v55, %v583_v51 }
 0x177   : > { %v1172_v59 = vmax.f32 %v1022_v56, 0.0  ;;  %v1024_v60 = vadd.f32 %v1023_v58, %v953_v57 }
 0x179   : > { %1180 = vst [vmem:[%s2502_s18 + $0x20] sm:$0xff] %v1172_v59  ;;  %v1173_v61 = vmax.f32 %v1024_v60, 0.0 }
 0x17b   : > { %1181 = vst [vmem:[%s2502_s18 + $0x28] sm:$0xff] %v1173_v61 }
 0x193   : > { %v1092_v6 = vpop.f32.mrf.mxu1 }
 0x194   : > { %v1163_v7 = vpop.f32.mrf.mxu0  ;;  %v1093_v8 = vadd.f32 %v1092_v6, %v587_v0 }
 0x195   : > { %v1094_v9 = vpop.f32.mrf.mxu1 }
 0x196   : > { %v1164_v10 = vadd.f32 %v1163_v7, %v1093_v8  ;;  %v1095_v11 = vadd.f32 %v1094_v9, %v591_v3  ;;  %v1165_v12 = vpop.f32.mrf.mxu0 }
 0x198   : > { %v1174_v13 = vmax.f32 %v1164_v10, 0.0  ;;  %v1166_v14 = vadd.f32 %v1165_v12, %v1095_v11 }
 0x19a   : > { %1182 = vst [vmem:[%s2502_s18 + $0x30] sm:$0xff] %v1174_v13  ;;  %v1175_v15 = vmax.f32 %v1166_v14, 0.0 }
 0x19c   : > { %1183 = vst [vmem:[%s2502_s18 + $0x38] sm:$0xff] %v1175_v15 }
 0x19d PF: > { %s13_s12 = sadd.s32 1, %s1269_s12  }
 0x19e   : > { %p10_p4 = scmp.ge.s32.totalorder %s13_s12, 6  }
 0x1a0   :  { %12 = sbr.rel (!%p10_p4) target bundleno = 1 (0x1), region = 62 }

</bundles_post_ra>
